<compile_context>
chip_gen: v5e
topology: v5e:2x2
jax: 0.10.0
libtpu: 0.0.40
codegen_flags: <defaults>
</compile_context>

<pallas_src>
import math

import jax
import jax.numpy as jnp
import numpy as np
from jax import lax
from jax.experimental import pallas as pl
from jax.experimental.pallas import tpu as pltpu


# ----------------------------------------------------------------------------
# Pallas kernel
# ----------------------------------------------------------------------------
def _hologram_kernel(a_ref, b_ref, cair_ref, thick_ref, mask_ref,
                     fr_ref, fi_ref, or_ref, oi_ref):
    """One grid step = one (spatial tile, wavelength) pair, ALL batches.

    a_ref / b_ref / cair_ref : SMEM f32[C] per-wavelength constants
        loss  = exp(a[c] * t)
        angle = b[c] * t + cair[c]       (phase delay + constant air phase)
    thick_ref, mask_ref      : VMEM f32[TS, 128]  (resident across wavelengths)
    fr_ref, fi_ref           : VMEM f32[B, 1, TS, 128]   field real / imag
    or_ref, oi_ref           : VMEM f32[B, 1, TS, 128]   output real / imag
    """
    c = pl.program_id(1)
    a = a_ref[c]
    b = b_ref[c]
    cair = cair_ref[c]

    t = thick_ref[...]
    amp = mask_ref[...] * jnp.exp(a * t)      # aperture mask folded into loss
    angle = b * t + cair
    ps_re = amp * jnp.cos(angle)              # phase plane (shared by batch)
    ps_im = amp * jnp.sin(angle)

    fr = fr_ref[...]                          # [B, 1, TS, 128]
    fi = fi_ref[...]
    # complex multiply; phase plane broadcast over the batch dimension
    or_ref[...] = fr * ps_re - fi * ps_im
    oi_ref[...] = fr * ps_im + fi * ps_re


def _choose_spatial_tile(S, B, vmem_budget_bytes=24 * 1024 * 1024):
    """Largest sublane-aligned tile that divides S and fits the VMEM budget.

    Per TS-row budget (bytes): double-buffered thickness+mask (2 planes) plus
    double-buffered field in/out real/imag (4*B planes), each 128 lanes * 4 B.
    """
    per_ts = 2 * (2 + 4 * B) * 128 * 4
    cap = (vmem_budget_bytes // per_ts) // 8 * 8
    cap = max(8, cap)
    if S <= cap:
        return S                              # single full block (always legal)
    for ts in range(cap, 7, -8):              # multiples of 8 only
        if S % ts == 0:
            return ts
    return S                                  # fallback: one full-extent block


def _aperture_mask(H, W, dx, dy):
    """Circular aperture (torch.meshgrid 'ij' convention); R^2 <= r^2, no sqrt."""
    r = max(dx * H, dy * W) / 2.0
    x = jnp.linspace(-dx * H / 2.0, dx * H / 2.0, H, dtype=jnp.float32)
    y = jnp.linspace(-dy * W / 2.0, dy * W / 2.0, W, dtype=jnp.float32)
    X, Y = jnp.meshgrid(x, y, indexing="ij")
    return jnp.where(X * X + Y * Y <= r * r, 1.0, 0.0).astype(jnp.float32)


def hologram_pallas(field, wavelengths, thickness, *, epsilon, tand, dx, dy):
    """mask * field * phase_shift   for complex field [B, C, H, W]."""
    B, C, H, W = field.shape
    assert (H * W) % 128 == 0, "H*W must be a multiple of 128 for lane-dense tiling"
    S = (H * W) // 128
    TS = _choose_spatial_tile(S, B)
    nS = S // TS

    sqrt_eps = math.sqrt(float(epsilon))
    wl = wavelengths.astype(jnp.float32)
    k = (2.0 * math.pi) / wl                               # [C]
    max_t = jnp.max(thickness)                             # hoisted global max
    a = ((-0.5 * float(tand) * sqrt_eps) * k).astype(jnp.float32)   # loss coef
    b = (-(sqrt_eps - 1.0) * k).astype(jnp.float32)                 # phase coef
    cair = (-k * max_t).astype(jnp.float32)                         # air phase

    mask = _aperture_mask(H, W, float(dx), float(dy))

    thick_flat = thickness.astype(jnp.float32).reshape(S, 128)
    mask_flat = mask.reshape(S, 128)
    fr = jnp.real(field).astype(jnp.float32).reshape(B, C, S, 128)
    fi = jnp.imag(field).astype(jnp.float32).reshape(B, C, S, 128)

    # explicit VMEM budget: double-buffered thickness/mask + 4*B field planes
    block_bytes = TS * 128 * 4
    est = 2 * (2 * block_bytes + 4 * B * block_bytes)
    vmem_limit = int(min(48 * 1024 * 1024, max(32 * 1024 * 1024, 2 * est)))

    out_re, out_im = pl.pallas_call(
        _hologram_kernel,
        out_shape=(jax.ShapeDtypeStruct((B, C, S, 128), jnp.float32),
                   jax.ShapeDtypeStruct((B, C, S, 128), jnp.float32)),
        grid_spec=pltpu.PrefetchScalarGridSpec(
            num_scalar_prefetch=0,
            grid=(nS, C),
            in_specs=[
                pl.BlockSpec(memory_space=pltpu.MemorySpace.SMEM),    # a    [C]
                pl.BlockSpec(memory_space=pltpu.MemorySpace.SMEM),    # b    [C]
                pl.BlockSpec(memory_space=pltpu.MemorySpace.SMEM),    # cair [C]
                pl.BlockSpec((TS, 128), lambda s, c: (s, 0)),         # thickness
                pl.BlockSpec((TS, 128), lambda s, c: (s, 0)),         # mask
                pl.BlockSpec((B, 1, TS, 128), lambda s, c: (0, c, s, 0)),  # field re
                pl.BlockSpec((B, 1, TS, 128), lambda s, c: (0, c, s, 0)),  # field im
            ],
            out_specs=[
                pl.BlockSpec((B, 1, TS, 128), lambda s, c: (0, c, s, 0)),
                pl.BlockSpec((B, 1, TS, 128), lambda s, c: (0, c, s, 0)),
            ],
        ),
        compiler_params=pltpu.CompilerParams(
            dimension_semantics=("parallel", "parallel"),
            vmem_limit_bytes=vmem_limit),
    )(a, b, cair, thick_flat, mask_flat, fr, fi)

    return lax.complex(out_re, out_im).reshape(B, C, H, W)


# ----------------------------------------------------------------------------
# Plain-JAX glue replicating HologramElementOpt.forward (trainable=True)
# ----------------------------------------------------------------------------
def hologram_element_forward(field, wavelengths, spacing, logits, *,
                             epsilon, tand, holo_level, tolerance, key):
    dx, dy = spacing
    k_gumbel, k_noise = jax.random.split(key)

    # get_holo_sample(): F.gumbel_softmax(tau=1, hard=True) with
    # straight-through estimator (forward value == hard one-hot).
    u = jax.random.uniform(k_gumbel, logits.shape, minval=1e-20, maxval=1.0)
    gumbel = -jnp.log(-jnp.log(u))
    y = (logits + gumbel) / 1.0                                   # tau = 1
    y_soft = jax.nn.softmax(y, axis=-1)
    y_hard = jax.nn.one_hot(jnp.argmax(y, axis=-1), holo_level,
                            dtype=y_soft.dtype)
    sample = y_hard - lax.stop_gradient(y_soft) + y_soft          # straight-through
    levels = jnp.arange(holo_level, dtype=jnp.float32)
    holo_sample = jnp.sum(sample * levels[None, None, :], axis=-1)  # [H, W]

    # Max_thickness = max(wavelengths) / (sqrt(eps) - 1);  level -> thickness
    max_thickness = jnp.max(wavelengths) / (math.sqrt(epsilon) - 1.0)
    thickness_step = max_thickness / holo_level
    thickness = (holo_sample * thickness_step
                 + max_thickness * jnp.round(holo_sample / 1.0))  # step_height=1

    # TODO(synk): UniformNoise class is not in the provided source; assumed
    # additive U(-a, a) noise on the thickness.
    thickness = thickness + jax.random.uniform(
        k_noise, thickness.shape, minval=-tolerance, maxval=tolerance)
    thickness = thickness.astype(jnp.float32)

    out = hologram_pallas(field, wavelengths.astype(jnp.float32), thickness,
                          epsilon=epsilon, tand=tand, dx=dx, dy=dy)
    return out, thickness


# Pure-JAX reference of the kernel math (sanity check only)
def _reference(field, wavelengths, thickness, epsilon, tand, dx, dy):
    B, C, H, W = field.shape
    sqrt_eps = math.sqrt(epsilon)
    wl = wavelengths[:, None, None]
    t = thickness[None, :, :]
    loss = jnp.exp(-0.5 * (2 * jnp.pi / wl) * t * tand * sqrt_eps)
    phase_delay = jnp.exp(-1j * (2 * jnp.pi / wl) * t * (sqrt_eps - 1.0))
    air_phase = jnp.exp(-1j * (2 * jnp.pi / wl) * jnp.max(t))
    ps = loss * phase_delay * air_phase
    mask = _aperture_mask(H, W, dx, dy)
    return mask[None, None, :, :] * field * ps[None, :, :, :]


if __name__ == "__main__":
    key = jax.random.PRNGKey(0)
    B, C, H, W = 2, 3, 64, 64          # batch, wavelengths, holo_size
    holo_level = 6
    epsilon, tand = 2.5, 0.01          # material = [epsilon, loss tangent]
    tolerance = 0.1                    # fabrication noise (mm)
    dx = dy = 0.5                      # field spacing (mm)
    wavelengths = jnp.array([3.0, 2.0, 1.5], dtype=jnp.float32)  # mm

    k_logits, k_fr, k_fi, k_fwd = jax.random.split(key, 4)
    logits = jax.random.uniform(k_logits, (H, W, holo_level),
                                dtype=jnp.float32)        # torch.rand init
    field = (jax.random.normal(k_fr, (B, C, H, W), dtype=jnp.float32)
             + 1j * jax.random.normal(k_fi, (B, C, H, W), dtype=jnp.float32)
             ).astype(jnp.complex64)

    out, thickness = hologram_element_forward(
        field, wavelengths, (dx, dy), logits,
        epsilon=epsilon, tand=tand, holo_level=holo_level,
        tolerance=tolerance, key=k_fwd)
    out = jax.block_until_ready(out)

    ref = _reference(field, wavelengths, thickness, epsilon, tand, dx, dy)
    np.testing.assert_allclose(np.asarray(out), np.asarray(ref),
                               rtol=1e-3, atol=1e-3)
    print("KERNEL_OK")
</pallas_src>

<mosaic_0001>
module attributes {stable_mosaic.version = 11 : i64} {
  func.func @_hologram_kernel(%arg0: i32, %arg1: i32, %arg2: memref<3xf32, #tpu.memory_space<smem>>, %arg3: memref<3xf32, #tpu.memory_space<smem>>, %arg4: memref<3xf32, #tpu.memory_space<smem>>, %arg5: memref<32x128xf32, #tpu.memory_space<vmem>>, %arg6: memref<32x128xf32, #tpu.memory_space<vmem>>, %arg7: memref<2x1x32x128xf32, #tpu.memory_space<vmem>>, %arg8: memref<2x1x32x128xf32, #tpu.memory_space<vmem>>, %arg9: memref<2x1x32x128xf32, #tpu.memory_space<vmem>>, %arg10: memref<2x1x32x128xf32, #tpu.memory_space<vmem>>) attributes {dimension_semantics = [#tpu.dimension_semantics<parallel>, #tpu.dimension_semantics<parallel>], iteration_bounds = array<i64: 1, 3>, scalar_prefetch = 0 : i64, scratch_operands = 0 : i64, tpu.core_type = #tpu.core_type<tc>, window_params = [{transform_indices = @transform_0, window_bounds = array<i64: 3>}, {transform_indices = @transform_1, window_bounds = array<i64: 3>}, {transform_indices = @transform_2, window_bounds = array<i64: 3>}, {transform_indices = @transform_3, window_bounds = array<i64: 32, 128>}, {transform_indices = @transform_4, window_bounds = array<i64: 32, 128>}, {transform_indices = @transform_5, window_bounds = array<i64: 2, 1, 32, 128>}, {transform_indices = @transform_6, window_bounds = array<i64: 2, 1, 32, 128>}, {transform_indices = @transform_7, window_bounds = array<i64: 2, 1, 32, 128>}, {transform_indices = @transform_8, window_bounds = array<i64: 2, 1, 32, 128>}]} {
    %0 = arith.index_cast %arg1 : i32 to index
    %1 = memref.load %arg2[%0] : memref<3xf32, #tpu.memory_space<smem>>
    %2 = arith.index_cast %arg1 : i32 to index
    %3 = memref.load %arg3[%2] : memref<3xf32, #tpu.memory_space<smem>>
    %4 = arith.index_cast %arg1 : i32 to index
    %5 = memref.load %arg4[%4] : memref<3xf32, #tpu.memory_space<smem>>
    %c0 = arith.constant 0 : index
    %c0_0 = arith.constant 0 : index
    %6 = vector.load %arg5[%c0, %c0_0] : memref<32x128xf32, #tpu.memory_space<vmem>>, vector<32x128xf32>
    %c0_1 = arith.constant 0 : index
    %c0_2 = arith.constant 0 : index
    %7 = vector.load %arg6[%c0_1, %c0_2] : memref<32x128xf32, #tpu.memory_space<vmem>>, vector<32x128xf32>
    %8 = vector.broadcast %1 : f32 to vector<32x128xf32>
    %9 = arith.mulf %8, %6 : vector<32x128xf32>
    %10 = math.exp %9 : vector<32x128xf32>
    %11 = arith.mulf %7, %10 : vector<32x128xf32>
    %12 = vector.broadcast %3 : f32 to vector<32x128xf32>
    %13 = arith.mulf %12, %6 : vector<32x128xf32>
    %14 = vector.broadcast %5 : f32 to vector<32x128xf32>
    %15 = arith.addf %13, %14 : vector<32x128xf32>
    %16 = math.cos %15 : vector<32x128xf32>
    %17 = arith.mulf %11, %16 : vector<32x128xf32>
    %18 = math.sin %15 : vector<32x128xf32>
    %19 = arith.mulf %11, %18 : vector<32x128xf32>
    %c0_3 = arith.constant 0 : index
    %c0_4 = arith.constant 0 : index
    %c0_5 = arith.constant 0 : index
    %c0_6 = arith.constant 0 : index
    %20 = vector.load %arg7[%c0_3, %c0_4, %c0_5, %c0_6] : memref<2x1x32x128xf32, #tpu.memory_space<vmem>>, vector<2x1x32x128xf32>
    %c0_7 = arith.constant 0 : index
    %c0_8 = arith.constant 0 : index
    %c0_9 = arith.constant 0 : index
    %c0_10 = arith.constant 0 : index
    %21 = vector.load %arg8[%c0_7, %c0_8, %c0_9, %c0_10] : memref<2x1x32x128xf32, #tpu.memory_space<vmem>>, vector<2x1x32x128xf32>
    %22 = vector.shape_cast %17 : vector<32x128xf32> to vector<1x1x32x128xf32>
    %23 = vector.broadcast %22 : vector<1x1x32x128xf32> to vector<2x1x32x128xf32>
    %24 = arith.mulf %20, %23 : vector<2x1x32x128xf32>
    %25 = vector.shape_cast %19 : vector<32x128xf32> to vector<1x1x32x128xf32>
    %26 = vector.broadcast %25 : vector<1x1x32x128xf32> to vector<2x1x32x128xf32>
    %27 = arith.mulf %21, %26 : vector<2x1x32x128xf32>
    %28 = arith.subf %24, %27 : vector<2x1x32x128xf32>
    %c0_11 = arith.constant 0 : index
    %c0_12 = arith.constant 0 : index
    %c0_13 = arith.constant 0 : index
    %c0_14 = arith.constant 0 : index
    %29 = vector.load %arg9[%c0_11, %c0_12, %c0_13, %c0_14] : memref<2x1x32x128xf32, #tpu.memory_space<vmem>>, vector<2x1x32x128xf32>
    tpu.vector_store %arg9[%c0_11, %c0_12, %c0_13, %c0_14], %28 {strides = array<i32>} : memref<2x1x32x128xf32, #tpu.memory_space<vmem>>, vector<2x1x32x128xf32>,
    %30 = vector.shape_cast %19 : vector<32x128xf32> to vector<1x1x32x128xf32>
    %31 = vector.broadcast %30 : vector<1x1x32x128xf32> to vector<2x1x32x128xf32>
    %32 = arith.mulf %20, %31 : vector<2x1x32x128xf32>
    %33 = vector.shape_cast %17 : vector<32x128xf32> to vector<1x1x32x128xf32>
    %34 = vector.broadcast %33 : vector<1x1x32x128xf32> to vector<2x1x32x128xf32>
    %35 = arith.mulf %21, %34 : vector<2x1x32x128xf32>
    %36 = arith.addf %32, %35 : vector<2x1x32x128xf32>
    %c0_15 = arith.constant 0 : index
    %c0_16 = arith.constant 0 : index
    %c0_17 = arith.constant 0 : index
    %c0_18 = arith.constant 0 : index
    %37 = vector.load %arg10[%c0_15, %c0_16, %c0_17, %c0_18] : memref<2x1x32x128xf32, #tpu.memory_space<vmem>>, vector<2x1x32x128xf32>
    tpu.vector_store %arg10[%c0_15, %c0_16, %c0_17, %c0_18], %36 {strides = array<i32>} : memref<2x1x32x128xf32, #tpu.memory_space<vmem>>, vector<2x1x32x128xf32>,
    return
  }
  func.func @transform_0(%arg0: i32, %arg1: i32) -> i32 {
    %c0_i32 = arith.constant 0 : i32
    %c0_i32_0 = arith.constant 0 : i32
    return %c0_i32 : i32
  }
  func.func @transform_1(%arg0: i32, %arg1: i32) -> i32 {
    %c0_i32 = arith.constant 0 : i32
    %c0_i32_0 = arith.constant 0 : i32
    return %c0_i32 : i32
  }
  func.func @transform_2(%arg0: i32, %arg1: i32) -> i32 {
    %c0_i32 = arith.constant 0 : i32
    %c0_i32_0 = arith.constant 0 : i32
    return %c0_i32 : i32
  }
  func.func @transform_3(%arg0: i32, %arg1: i32) -> (i32, i32) {
    %c0_i32 = arith.constant 0 : i32
    %c0_i32_0 = arith.constant 0 : i32
    return %arg0, %c0_i32 : i32, i32
  }
  func.func @transform_4(%arg0: i32, %arg1: i32) -> (i32, i32) {
    %c0_i32 = arith.constant 0 : i32
    %c0_i32_0 = arith.constant 0 : i32
    return %arg0, %c0_i32 : i32, i32
  }
  func.func @transform_5(%arg0: i32, %arg1: i32) -> (i32, i32, i32, i32) {
    %c0_i32 = arith.constant 0 : i32
    %c0_i32_0 = arith.constant 0 : i32
    %c0_i32_1 = arith.constant 0 : i32
    return %c0_i32, %arg1, %arg0, %c0_i32_0 : i32, i32, i32, i32
  }
  func.func @transform_6(%arg0: i32, %arg1: i32) -> (i32, i32, i32, i32) {
    %c0_i32 = arith.constant 0 : i32
    %c0_i32_0 = arith.constant 0 : i32
    %c0_i32_1 = arith.constant 0 : i32
    return %c0_i32, %arg1, %arg0, %c0_i32_0 : i32, i32, i32, i32
  }
  func.func @transform_7(%arg0: i32, %arg1: i32) -> (i32, i32, i32, i32) {
    %c0_i32 = arith.constant 0 : i32
    %c0_i32_0 = arith.constant 0 : i32
    %c0_i32_1 = arith.constant 0 : i32
    return %c0_i32, %arg1, %arg0, %c0_i32_0 : i32, i32, i32, i32
  }
  func.func @transform_8(%arg0: i32, %arg1: i32) -> (i32, i32, i32, i32) {
    %c0_i32 = arith.constant 0 : i32
    %c0_i32_0 = arith.constant 0 : i32
    %c0_i32_1 = arith.constant 0 : i32
    return %c0_i32, %arg1, %arg0, %c0_i32_0 : i32, i32, i32, i32
  }
}

</mosaic_0001>

<bundles_post_ra>
// kernel: tpu_custom_call.1
= control target key start
LH: loop header
LB: loop body
LE: loop exit
PB: predicated region body
PF: predicated region fallthrough
CT: control target
= control target key end

     0   :  { %s3578_s0 = inlined_call_operand.hbm [shape: f32[3], index: 0, kind: input, shape index: {}]   ;;  %s3579_s1 = inlined_call_operand.hbm [shape: f32[3], index: 1, kind: input, shape index: {}]   ;;  %s3580_s2 = inlined_call_operand.vmem [shape: f32[3], index: 2, kind: input, shape index: {}]   ;;  %s3581_s3 = inlined_call_operand.hbm [shape: f32[32,128], index: 3, kind: input, shape index: {}]   ;;  %s3582_s4 = inlined_call_operand.hbm [shape: f32[32,128], index: 4, kind: input, shape index: {}]   ;;  %s3583_s5 = inlined_call_operand.hbm [shape: f32[2,3,32,128], index: 5, kind: input, shape index: {}]   ;;  %s3584_s6 = inlined_call_operand.hbm [shape: f32[2,3,32,128], index: 6, kind: input, shape index: {}]   ;;  %s3585_s7 = inlined_call_operand.hbm [shape: f32[2,3,32,128], index: 7, kind: output, shape index: {0}]   ;;  %s3586_s8 = inlined_call_operand.hbm [shape: f32[2,3,32,128], index: 8, kind: output, shape index: {1}]  }
   0x1   :  { %3589 = sst [smem:[#allocation39_spill]] %s3578_s0 }
   0x2   :  { %3590 = sst [smem:[#allocation40_spill]] %s3579_s1 }
   0x3   :  { %3591 = sst [smem:[#allocation41_spill]] %s3580_s2 }
   0x4   :  { %3592 = sst [smem:[#allocation42_spill]] %s3581_s3 }
   0x5   :  { %3593 = sst [smem:[#allocation43_spill]] %s3582_s4 }
   0x6   :  { %14 = vsyncpa [#allocation5], 0 }
   0x7   :  { %15 = vsyncpa [#allocation8], 0 }
   0x8   :  { %16 = vsyncpa [#allocation6], 0 }
   0x9   :  { %17 = vsyncpa [#allocation3], 0 }
   0xa   :  { %18 = vsyncpa [#allocation12], 0 }
   0xb   :  { %19 = vsyncpa [#allocation4], 0 }
   0xc   :  { %21 = vsyncpa [#allocation4 + $0x1], 0 }
   0xd   :  { %22 = vsyncpa [#allocation17], 0 }
   0xe   :  { %24 = vsyncpa [#allocation17 + $0x1], 0  ;;  %s2716_s27 = smov 0   ;;  %s2718_s28 = smov 0  }
   0xf   :  { %s2720_s29 = smov 0   ;;  %s2722_s30 = smov 0  }
  0x10   :  { %s2724_s9 = smov 0   ;;  %s2726_s10 = smov 0  }
  0x11 LB: > { %s2747_s11 = sadd.s32 4294967295, %s2629_s10   ;;  %s2197_s12 = sadd.s32 4294967294, %s2629_s10   ;;  %s2629_s10 = sphi %s2726_s10, %s30_s10   ;;  %s2625_s9 = sphi %s2724_s9, %s3623_s9   ;;  %s2621_s30 = sphi %s2722_s30, %s3622_s30   ;;  %s2617_s29 = sphi %s2720_s29, %s3621_s29   ;;  %s2613_s28 = sphi %s2718_s28, %s3620_s28   ;;  %s2609_s27 = sphi %s2716_s27, %s3619_s27  }
  0x12   : > { %s39_s13 = sadd.s32 1, %s2625_s9  ;;  %s166_s14 = sadd.s32 1, %s2617_s29 }
  0x13   : > { %p40_p0 = scmp.ge.s32.totalorder %s39_s13, 3  ;;  %p173_p1 = scmp.ne.s32.totalorder %s2617_s29, %s2613_s28 }
  0x14   : > { %p174_p2 = scmp.eq.s32.totalorder %s2629_s10, 0  ;;  %p179_p3 = scmp.ne.s32.totalorder %s2613_s28, %s2609_s27 }
  0x15   : > { %s3625_s13 = smov (%p40_p0, %s39_s13), 0  ;;  %p180_p5 = scmp.eq.s32.totalorder %s2747_s11, 0 }
  0x16   : > { %3594 = sst [smem:[#allocation36_spill]] %s3625_s13  ;;  %p2759_p4 = por %p174_p2, %p173_p1 }
  0x17   : > { %s161_s16 = ssub.s32 %s2625_s9, %s3625_s13  ;;  %p233_p6 = scmp.eq.s32.totalorder %s2747_s11, 2 }
  0x18   : > { %p164_p7 = scmp.eq.s32.totalorder %s161_s16, 0  ;;  %p2769_p8 = por %p180_p5, %p179_p3 }
  0x19   : > { %p2773_p9 = por %p233_p6, %p173_p1  ;;  %p239_p10 = scmp.eq.s32.totalorder %s2197_s12, 2 }
  0x1a   : > { %s2778_s19 = scalar_select %p164_p7, %s2617_s29, %s166_s14  }
  0x1b   : > { %p2780_p11 = por %p239_p10, %p179_p3  ;;  %p2198_p12 = scmp.ge.s32.totalorder %s2629_s10, 1 }
  0x1c   : > { %3598 = sst [smem:[#allocation37_spill]] %s2778_s19  ;;  %p274_p13 = scmp.lt.s32.totalorder %s2629_s10, 4 }
  0x1d   : > { %s3599_s20 = scalar_select %p2780_p11, 1, 0 }
  0x1e   : > { %s3601_s0 = sld [smem:[#allocation39_spill]]  ;;  %p2789_p0 = pnand %p2198_p12, %p274_p13 }
  0x1f   : > { %3600 = sst [smem:[#allocation38_spill]] %s3599_s20  ;;  %s2632_s14 = smov [#allocation7]  }
  0x20   : > { %s3603_s1 = sld [smem:[#allocation40_spill]]  ;;  %p2315_p1 = pneg %p2789_p0 }
  0x21   : > { %s3604_s2 = sld [smem:[#allocation41_spill]]  ;;  %s2633_s16 = smov [#allocation9]  }
  0x22   : > { %p2803_p2 = pnand %p2315_p1, %p180_p5  ;;  %s3606_s3 = sld [smem:[#allocation42_spill]] }
  0x23   : > { %s2635_s19 = smov 128   ;;  %s2636_s20 = smov 8  }
  0x24   : > { %s286_s23 = sshll.u32 %s3601_s0, 4  ;;  %s2631_s0 = smov [#allocation2]   ;;  %s287_s23 = int_to_ptr.hbm [resolvable:$true] %s286_s23 }
  0x25   : > { %2318 = dma.hbm_to_smem (!%p2803_p2), %s287_s23, 16, %s2631_s0, [#allocation5]  }
  0x26   : > { %s296_s12 = sshll.u32 %s3603_s1, 4  ;;  %s2634_s1 = smov [#allocation10]   ;;  %s297_s12 = int_to_ptr.hbm [resolvable:$true] %s296_s12 }
  0x27   : > { %s306_s13 = sshll.u32 %s3604_s2, 4  ;;  %s320_s2 = sshll.u32 %s2634_s1, 4  ;;  %s307_s13 = int_to_ptr.vmem [resolvable:$true] %s306_s13  ;;  %s321_s2 = int_to_ptr.vmem [resolvable:$true] %s320_s2 }
  0x28   : > { %s318_s26 = sshll.u32 %s3606_s3, 4  ;;  %s3607_s4 = sld [smem:[#allocation43_spill]]  ;;  %s319_s26 = int_to_ptr.hbm [resolvable:$true] %s318_s26 }
  0x29   : > { %2321 = dma.hbm_to_smem (!%p2803_p2), %s297_s12, 16, %s2632_s14, [#allocation8]  }
  0x2a   : > { %2324 = dma.vmem_to_smem (!%p2803_p2), %s307_s13, 16, %s2633_s16, [#allocation6]  }
  0x2b   : > { %2327 = dma.hbm_to_vmem [thread:$0]  (!%p2803_p2), %s319_s26, 512, %s321_s2, [#allocation3], %s2635_s19, %s2635_s19, %s2636_s20  }
  0x2c   : > { %s2637_s0 = smov [#allocation11]   ;;  %p2204_p3 = scmp.ge.s32.totalorder %s2629_s10, 3 }
  0x2d   : > { %s337_s23 = sshll.u32 %s2637_s0, 4  ;;  %s338_s23 = int_to_ptr.vmem [resolvable:$true] %s337_s23 }
  0x2e   : > { %s335_s3 = sshll.u32 %s3607_s4, 4  ;;  %347 = sbr.rel (%p2204_p3) target bundleno = 78 (0x4e), region = 36  ;;  %s336_s3 = int_to_ptr.hbm [resolvable:$true] %s335_s3 }
  0x2f   : > { %2330 = dma.hbm_to_vmem [thread:$0]  (!%p2803_p2), %s336_s3, 512, %s338_s23, [#allocation12], %s2635_s19, %s2635_s19, %s2636_s20  }
  0x33   : > { %s351_s1 = sand.u32 1, %s2629_s10   ;;  %s353_s2 = sand.u32 1, %s2617_s29  }
  0x34   : > { %s2826_s13 = sshll.u32 %s353_s2, 6  ;;  %s2257_s12 = sshll.u32 %s2625_s9, 5 }
  0x35   : > { %s362_s3 = scalar_lea.hbm %s3583_s5, %s2257_s12  ;;  %s355_s19 = scalar_lea.vmem [#allocation13], %s2826_s13 }
  0x36   : > { %s377_s20 = sshll.u32 %s355_s19, 4  ;;  %s375_s16 = sshll.u32 %s362_s3, 4  ;;  %s378_s20 = int_to_ptr.vmem [resolvable:$true] %s377_s20  ;;  %s376_s16 = int_to_ptr.hbm [resolvable:$true] %s375_s16 }
  0x37   : > { %s2271_s21 = scalar_select %p2759_p4, [#allocation0], [#allocation26] }
  0x38   : > { %s2638_s25 = smov 1536   ;;  %s2639_s0 = smov 512  }
  0x39   : > { %s367_s22 = sld [smem:[%s2271_s21]]   ;;  %s2640_s23 = smov 4  }
  0x3a   : > { %2272 = sst [smem:[#allocation19]] (%p2759_p4), %s2638_s25  ;;  %s2641_s2 = smov 128  }
  0x3b   : > { %2273 = sst [smem:[#allocation19 + $0x1]] (%p2759_p4), %s2639_s0  ;;  %s2642_s3 = smov 8  }
  0x3c   : > { %2274 = sst [smem:[#allocation19 + $0x2]] (%p2759_p4), %s2640_s23  ;;  %s352_s19 = scalar_lea.sflag [#allocation3], %s351_s1 }
  0x3d   : > { %2275 = sst [smem:[#allocation19 + $0x3]] (%p2759_p4), %s2641_s2  ;;  %s2643_s21 = smov [#allocation18]  }
  0x3e   : > { %2276 = sst [smem:[#allocation19 + $0x4]] (%p2759_p4), %s2641_s2 }
  0x3f   : > { %s2208_s26 = sshll.u32 %s367_s22, 26  ;;  %2277 = sst [smem:[#allocation19 + $0x5]] (%p2759_p4), %s2642_s3 }
  0x40   : > { %s2209_s14 = sadd.s32 134217728, %s2208_s26 }
  0x41   : > { %2278 = dma.general (%p2759_p4), %s376_s16, 1024, %s378_s20, %s352_s19, %s2643_s21, [#allocation19], %s2209_s14, 0  }
  0x42   : > { %s411_s22 = scalar_lea.hbm %s3584_s6, %s2257_s12  ;;  %s404_s2 = scalar_lea.vmem [#allocation14], %s2826_s13 }
  0x43   : > { %s2279_s0 = scalar_select %p2759_p4, [#allocation0], [#allocation27] }
  0x44   : > { %s424_s23 = sshll.u32 %s411_s22, 4  ;;  %s426_s26 = sshll.u32 %s404_s2, 4  ;;  %s425_s23 = int_to_ptr.hbm [resolvable:$true] %s424_s23  ;;  %s427_s26 = int_to_ptr.vmem [resolvable:$true] %s426_s26 }
  0x45   : > { %s416_s1 = sld [smem:[%s2279_s0]]   ;;  %s2644_s20 = smov 1536  }
  0x46   : > { %2280 = sst [smem:[#allocation21]] (%p2759_p4), %s2644_s20  ;;  %s2645_s4 = smov 512  }
  0x47   : > { %2281 = sst [smem:[#allocation21 + $0x1]] (%p2759_p4), %s2645_s4  ;;  %s2646_s16 = smov 4  }
  0x48   : > { %2282 = sst [smem:[#allocation21 + $0x2]] (%p2759_p4), %s2646_s16  ;;  %s2647_s12 = smov 128  }
  0x49   : > { %2283 = sst [smem:[#allocation21 + $0x3]] (%p2759_p4), %s2647_s12  ;;  %s2648_s3 = smov 8  }
  0x4a   : > { %2284 = sst [smem:[#allocation21 + $0x4]] (%p2759_p4), %s2647_s12  ;;  %s2649_s21 = smov [#allocation20]  }
  0x4b   : > { %s2213_s14 = sshll.u32 %s416_s1, 26  ;;  %2285 = sst [smem:[#allocation21 + $0x5]] (%p2759_p4), %s2648_s3 }
  0x4c   : > { %s2214_s13 = sadd.s32 134217728, %s2213_s14 }
  0x4d   : > { %2286 = dma.general (%p2759_p4), %s425_s23, 1024, %s427_s26, %s352_s19, %s2649_s21, [#allocation21], %s2214_s13, 0  }
  0x4e PF: > { %451 = sbr.rel (%p2789_p0) target bundleno = 341 (0x155), region = 48 }
  0x53   : > { %2576 = dma.done.wait (%p180_p5), [#allocation5], 16  }
  0x54   : > { %2578 = vsyncadd (%p180_p5), [#allocation5], 4294967280 }
  0x55   : > { %2580 = dma.done.wait (%p180_p5), [#allocation8], 16  }
  0x56   : > { %2582 = vsyncadd (%p180_p5), [#allocation8], 4294967280 }
  0x57   : > { %2584 = dma.done.wait (%p180_p5), [#allocation6], 16  }
  0x58   : > { %2586 = vsyncadd (%p180_p5), [#allocation6], 4294967280 }
  0x59   : > { %2588 = dma.done.wait (%p180_p5), [#allocation3], 512  }
  0x5a   : > { %2590 = vsyncadd (%p180_p5), [#allocation3], 4294966784 }
  0x5b   : > { %2592 = dma.done.wait (%p180_p5), [#allocation12], 512  }
  0x5c   : > { %2594 = vsyncadd (%p180_p5), [#allocation12], 4294966784  ;;  %s478_s15 = sand.u32 1, %s2747_s11   ;;  %s2893_s24 = sand.u32 1, %s2613_s28  }
  0x5d   : > { %s2896_s19 = sshll.u32 %s2893_s24, 6  ;;  %s479_s25 = scalar_lea.sflag [#allocation3], %s478_s15 }
  0x5e   : > { %s2899_s22 = scalar_lea.vmem [#allocation13], %s2896_s19 }
  0x5f   : > { %2596 = dma.done.wait (%p2769_p8), %s479_s25, 2048  }
  0x60   : > { %2598 = vsyncadd (%p2769_p8), %s479_s25, 4294965248  ;;  %s2906_s0 = scalar_lea.vmem [#allocation14], %s2896_s19 }
  0x61   : > { %498 = sfence }
  0x62   : > { %s544_s11 = sld [smem:[#allocation7 + %s2621_s30]]  ;;  %v2910_v0 = vld [vmem:[#allocation10] sm:$0xff]  ;;  %v2912_v1 = vld [vmem:[#allocation10 + $0x8] sm:$0xff]  ;;  %v548_v2 = vld [vmem:[#allocation10 + $0x10] sm:$0xff]  ;;  %v2650_v36 = vmov 683565275  }
  0x63   : > { %s545_s23 = sld [smem:[#allocation9 + %s2621_s30]]  ;;  %v2651_v38 = vmov 2475754826   ;;  %v2652_v40 = vmov 2131351028   ;;  %s3316_s2 = scalar_lea.vmem [#allocation15], %s2896_s19 }
  0x64   : > { %v2653_v42 = vmov 2102212464   ;;  %v2654_v44 = vmov 920167782   ;;  %v2655_v53 = vmov 1326507024  }
  0x65   : > { %s3021_s17 = sld [smem:[#allocation2 + %s2621_s30]]  ;;  %s3488_s26 = scalar_lea.vmem [#allocation16], %s2896_s19 }
  0x66   : > { %s1906_s1 = scalar_lea.sflag [#allocation4], %s2893_s24  ;;  %s1911_s20 = scalar_lea.sflag [#allocation17], %s2893_s24 }
  0x68   : > { %v2914_v3 = vstv %s544_s11 }
  0x69   : > { %v572_v4 = vmul.f32 %v2914_v3, %v2910_v0  ;;  %v2918_v5 = vstv %s545_s23  ;;  %v573_v6 = vmul.f32 %v2914_v3, %v2912_v1  ;;  %v574_v7 = vmul.f32 %v2914_v3, %v548_v2 }
  0x6b   : > { %v2924_v8 = vadd.f32 %v2918_v5, %v572_v4  ;;  %v2927_v9 = vadd.f32 %v2918_v5, %v573_v6  ;;  %v2930_v10 = vadd.f32 %v2918_v5, %v574_v7 }
  0x6d   : > { %v581_v11 = vand.u32 2147483647, %v2924_v8  ;;  %v584_v12 = vand.u32 2139095040, %v2924_v8  ;;  %v735_v13 = vand.u32 2147483647, %v2927_v9  ;;  %v738_v14 = vand.u32 2139095040, %v2927_v9 }
  0x6e   : > { %v892_v15 = vand.u32 2139095040, %v2930_v10 }
  0x6f   : > { %v585_v16 = vshrl.u32 %v584_v12, 23  ;;  %v588_v17 = vand.u32 8388607, %v581_v11  ;;  %v739_v18 = vshrl.u32 %v738_v14, 23  ;;  %v742_v19 = vand.u32 8388607, %v735_v13 }
  0x70   : > { %v893_v23 = vshrl.u32 %v892_v15, 23 }
  0x71   : > { %v2225_v20 = vadd.s32 4294967169, %v585_v16  ;;  %v589_v21 = vor.u32 8388608, %v588_v17  ;;  %v2228_v22 = vadd.s32 4294967169, %v739_v18  ;;  %v743_v25 = vor.u32 8388608, %v742_v19 }
  0x72   : > { %v2231_v29 = vadd.s32 4294967169, %v893_v23 }
  0x73   : > { %v591_v24 = vadd.s32 1, %v2225_v20  ;;  %v745_v26 = vadd.s32 1, %v2228_v22  ;;  %v2941_v28 = vshll.u32 %v589_v21, 8  ;;  %v2947_v34 = vshll.u32 %v743_v25, 8 }
  0x74   : > { %v2955_v47 = vadd.s32 1, %v2231_v29 }
  0x75   : > { %vm592_vm0 = vcmp.gt.s32.totalorder %v591_v24, 0  ;;  %vm746_vm1 = vcmp.gt.s32.totalorder %v745_v26, 0  ;;  %v630_v46 = vand.u32 65535, %v2941_v28  ;;  %v631_v51 = vshrl.u32 %v2941_v28, 16 }
  0x76   : > { %v593_v27 = vsel %vm592_vm0, %v591_v24, 0  ;;  %v747_v31 = vsel %vm746_vm1, %v745_v26, 0  ;;  %vm900_vm15 = vcmp.gt.s32.totalorder %v2955_v47, 0 }
  0x77   : > { %v595_v30 = vand.u32 31, %v593_v27  ;;  %v2943_v32 = vshrl.u32 %v593_v27, 5  ;;  %v2945_v33 = vand.u32 31, %v747_v31  ;;  %v2975_v2 = vshrl.u32 %v747_v31, 5 }
  0x79   : > { %v596_v35 = vsub.s32 32, %v595_v30  ;;  %v598_v37 = vshll.u32 %v2650_v36, %v595_v30  ;;  %v601_v39 = vshll.u32 %v2651_v38, %v595_v30  ;;  %v604_v41 = vshll.u32 %v2652_v40, %v595_v30 }
  0x7a   : > { %v607_v43 = vshll.u32 %v2653_v42, %v595_v30  ;;  %v610_v45 = vshll.u32 %v2654_v44, %v595_v30  ;;  %vm613_vm2 = vcmp.lt.s32.totalorder %v2943_v32, 1  ;;  %vm616_vm3 = vcmp.lt.s32.totalorder %v2943_v32, 4 }
  0x7b   : > { %v599_v48 = vshrl.u32 %v2651_v38, %v596_v35  ;;  %v602_v49 = vshrl.u32 %v2652_v40, %v596_v35  ;;  %v605_v50 = vshrl.u32 %v2653_v42, %v596_v35  ;;  %v608_v52 = vshrl.u32 %v2654_v44, %v596_v35 }
  0x7c   : > { %v611_v54 = vshrl.u32 %v2655_v53, %v596_v35  ;;  %v2966_v58 = vsub.s32 32, %v2945_v33  ;;  %v597_v59 = vshrl.u32 %v2650_v36, %v596_v35  ;;  %vm615_vm4 = vcmp.lt.s32.totalorder %v2943_v32, 3 }
  0x7d   : > { %v600_v55 = vor.u32 %v599_v48, %v598_v37  ;;  %v603_v56 = vor.u32 %v602_v49, %v601_v39  ;;  %v606_v57 = vor.u32 %v605_v50, %v604_v41  ;;  %v609_v60 = vor.u32 %v608_v52, %v607_v43 }
  0x7e   : > { %v612_v61 = vor.u32 %v611_v54, %v610_v45  ;;  %vm614_vm5 = vcmp.lt.s32.totalorder %v2943_v32, 2  ;;  %v752_v7 = vshll.u32 %v2650_v36, %v2945_v33  ;;  %v755_v12 = vshll.u32 %v2651_v38, %v2945_v33 }
  0x7f   : > { %v621_v62 = vsel %vm613_vm2, %v600_v55, %v603_v56  ;;  %v625_v63 = vsel %vm613_vm2, %v603_v56, %v606_v57  ;;  %v622_v4 = vsel %vm616_vm3, %v609_v60, 920167782  ;;  %v618_v14 = vsel %vm616_vm3, %v606_v57, 2102212464 }
  0x80   : > { %v626_v6 = vsel %vm616_vm3, %v612_v61, 1326507024  ;;  %v623_v15 = vsel %vm615_vm4, %v606_v57, %v622_v4  ;;  %v753_v17 = vshrl.u32 %v2651_v38, %v2966_v58  ;;  %v617_v18 = vsel %vm613_vm2, %v597_v59, %v600_v55 }
  0x81   : > { %v627_v16 = vsel %vm615_vm4, %v609_v60, %v626_v6  ;;  %v624_v19 = vsel %vm614_vm5, %v621_v62, %v623_v15  ;;  %v756_v21 = vshrl.u32 %v2652_v40, %v2966_v58  ;;  %v619_v26 = vsel %vm615_vm4, %v603_v56, %v618_v14 }
  0x82   : > { %v628_v20 = vsel %vm614_vm5, %v625_v63, %v627_v16  ;;  %v654_v24 = vand.u32 65535, %v624_v19  ;;  %v655_v25 = vshrl.u32 %v624_v19, 16  ;;  %v3003_v27 = vor.u32 %v753_v17, %v752_v7 }
  0x83   : > { %v632_v22 = vand.u32 65535, %v628_v20  ;;  %v633_v23 = vshrl.u32 %v628_v20, 16  ;;  %v3005_v29 = vor.u32 %v756_v21, %v755_v12  ;;  %v758_v30 = vshll.u32 %v2652_v40, %v2945_v33 }
  0x84   : > { %v759_v39 = vshrl.u32 %v2653_v42, %v2966_v58  ;;  %v656_v43 = vmul.u32 %v654_v24, %v630_v46  ;;  %v657_v45 = vmul.u32 %v655_v25, %v630_v46  ;;  %v658_v48 = vmul.u32 %v654_v24, %v631_v51 }
  0x85   : > { %v634_v31 = vmul.u32 %v632_v22, %v630_v46  ;;  %v635_v35 = vmul.u32 %v633_v23, %v630_v46  ;;  %v636_v37 = vmul.u32 %v632_v22, %v631_v51  ;;  %v637_v41 = vmul.u32 %v633_v23, %v631_v51 }
  0x86   : > { %v659_v54 = vmul.u32 %v655_v25, %v631_v51  ;;  %v660_v56 = vshll.u32 %v657_v45, 16  ;;  %v661_v57 = vshrl.u32 %v657_v45, 16  ;;  %v662_v59 = vshll.u32 %v658_v48, 16 }
  0x87   : > { %v638_v49 = vshll.u32 %v635_v35, 16  ;;  %v639_v50 = vshrl.u32 %v635_v35, 16  ;;  %v640_v52 = vshll.u32 %v636_v37, 16  ;;  %v641_v55 = vshrl.u32 %v636_v37, 16 }
  0x88   : > { %v663_v61 = vshrl.u32 %v658_v48, 16  ;;  %v761_v62 = vshll.u32 %v2653_v42, %v2945_v33  ;;  %v2656_v63 = vmov 0   ;;  %vm664_vm7 = vc.u32 %v656_v43, %v660_v56 }
  0x89   : > { %vm642_vm6 = vc.u32 %v634_v31, %v638_v49  ;;  %v644_v60 = vadd.s32 %v638_v49, %v634_v31  ;;  %v666_v46 = vadd.s32 %v660_v56, %v656_v43  ;;  %v762_v6 = vshrl.u32 %v2654_v44, %v2966_v58 }
  0x8a   : > { %v643_v4 = vsel %vm642_vm6, 1, %v2656_v63  ;;  %v665_v7 = vsel %vm664_vm7, 1, %v2656_v63  ;;  %v764_v12 = vshll.u32 %v2654_v44, %v2945_v33  ;;  %v760_v16 = vor.u32 %v759_v39, %v758_v30 }
  0x8b   : > { %v645_v51 = vadd.s32 %v643_v4, %v637_v41  ;;  %vm646_vm8 = vc.u32 %v644_v60, %v640_v52  ;;  %v667_v15 = vadd.s32 %v665_v7, %v659_v54  ;;  %vm668_vm9 = vc.u32 %v666_v46, %v662_v59 }
  0x8c   : > { %v647_v14 = vsel %vm646_vm8, 1, %v2656_v63  ;;  %v669_v19 = vsel %vm668_vm9, 1, %v2656_v63  ;;  %v763_v20 = vor.u32 %v762_v6, %v761_v62  ;;  %v765_v21 = vshrl.u32 %v2655_v53, %v2966_v58 }
  0x8d   : > { %v649_v17 = vadd.s32 %v647_v14, %v645_v51  ;;  %v3026_v22 = vadd.s32 %v666_v46, %v662_v59  ;;  %v671_v23 = vadd.s32 %v669_v19, %v667_v15  ;;  %vm767_vm10 = vcmp.lt.s32.totalorder %v2975_v2, 1 }
  0x8e   : > { %vm769_vm11 = vcmp.lt.s32.totalorder %v2975_v2, 3  ;;  %v766_v24 = vor.u32 %v765_v21, %v764_v12  ;;  %vm768_vm12 = vcmp.lt.s32.totalorder %v2975_v2, 2  ;;  %vm770_vm13 = vcmp.lt.s32.totalorder %v2975_v2, 4 }
  0x8f   : > { %v650_v33 = vadd.s32 %v649_v17, %v639_v50  ;;  %v620_v25 = vsel %vm614_vm5, %v617_v18, %v619_v26  ;;  %v672_v30 = vadd.s32 %v671_v23, %v661_v57  ;;  %v775_v31 = vsel %vm767_vm10, %v3003_v27, %v3005_v29 }
  0x90   : > { %v776_v35 = vsel %vm770_vm13, %v763_v20, 920167782  ;;  %v779_v32 = vsel %vm767_vm10, %v3005_v29, %v760_v16  ;;  %v784_v18 = vand.u32 65535, %v2947_v34  ;;  %v780_v43 = vsel %vm770_vm13, %v766_v24, 1326507024 }
  0x91   : > { %v3040_v37 = vadd.s32 %v650_v33, %v641_v55  ;;  %v777_v39 = vsel %vm769_vm11, %v760_v16, %v776_v35  ;;  %v673_v26 = vadd.s32 %v672_v30, %v663_v61  ;;  %v785_v45 = vshrl.u32 %v2947_v34, 16 }
  0x92   : > { %v778_v41 = vsel %vm768_vm12, %v775_v31, %v777_v39  ;;  %v674_v48 = vmul.u32 %v2941_v28, %v620_v25  ;;  %v781_v49 = vsel %vm769_vm11, %v763_v20, %v780_v43  ;;  %v3061_v56 = vstv %s3021_s17 }
  0x93   : > { %vm676_vm14 = vc.u32 %v3040_v37, %v3026_v22  ;;  %v808_v50 = vand.u32 65535, %v778_v41  ;;  %v677_v52 = vadd.s32 1, %v673_v26  ;;  %v782_v54 = vsel %vm768_vm12, %v779_v32, %v781_v49 }
  0x94   : > { %v809_v55 = vshrl.u32 %v778_v41, 16  ;;  %v786_v57 = vand.u32 65535, %v782_v54  ;;  %v787_v59 = vshrl.u32 %v782_v54, 16  ;;  %v751_v28 = vshrl.u32 %v2650_v36, %v2966_v58 }
  0x95   : > { %v678_v60 = vsel %vm676_vm14, %v677_v52, %v673_v26  ;;  %v812_v62 = vmul.u32 %v808_v50, %v785_v45  ;;  %v810_v51 = vmul.u32 %v808_v50, %v784_v18  ;;  %v555_v7 = vmul.f32 %v3061_v56, %v2910_v0 }
  0x96   : > { %v811_v61 = vmul.u32 %v809_v55, %v784_v18  ;;  %v679_v4 = vadd.s32 %v678_v60, %v674_v48  ;;  %v788_v46 = vmul.u32 %v786_v57, %v784_v18  ;;  %v789_v6 = vmul.u32 %v787_v59, %v784_v18 }
  0x97   : > { %v790_v12 = vmul.u32 %v786_v57, %v785_v45  ;;  %v3069_v15 = vsel %vm900_vm15, %v2955_v47, 0  ;;  %v772_v19 = vsel %vm770_vm13, %v760_v16, 2102212464  ;;  %v791_v20 = vmul.u32 %v787_v59, %v785_v45 }
  0x98   : > { %v814_v14 = vshll.u32 %v811_v61, 16  ;;  %v680_v17 = vadd.s32 536870912, %v679_v4  ;;  %v792_v58 = vshll.u32 %v789_v6, 16  ;;  %v771_v21 = vsel %vm767_vm10, %v751_v28, %v3003_v27 }
  0x99   : > { %v794_v23 = vshll.u32 %v790_v12, 16  ;;  %v813_v33 = vmul.u32 %v809_v55, %v785_v45  ;;  %v816_v24 = vshll.u32 %v812_v62, 16  ;;  %v773_v47 = vsel %vm769_vm11, %v3005_v29, %v772_v19 }
  0x9a   : > { %v681_v25 = vshrl.u32 %v680_v17, 30  ;;  %vm796_vm0 = vc.u32 %v788_v46, %v792_v58  ;;  %v798_v0 = vadd.s32 %v792_v58, %v788_v46  ;;  %vm818_vm1 = vc.u32 %v810_v51, %v814_v14 }
  0x9b   : > { %v797_v30 = vsel %vm796_vm0, 1, %v2656_v63  ;;  %v819_v16 = vsel %vm818_vm1, 1, %v2656_v63  ;;  %v820_v31 = vadd.s32 %v814_v14, %v810_v51  ;;  %v793_v39 = vshrl.u32 %v789_v6, 16 }
  0x9c   : > { %v682_v35 = vshll.u32 %v681_v25, 30  ;;  %v799_v32 = vadd.s32 %v797_v30, %v791_v20  ;;  %vm800_vm2 = vc.u32 %v798_v0, %v794_v23  ;;  %v815_v18 = vshrl.u32 %v811_v61, 16 }
  0x9d   : > { %v801_v27 = vsel %vm800_vm2, 1, %v2656_v63  ;;  %v821_v26 = vadd.s32 %v819_v16, %v813_v33  ;;  %vm822_vm3 = vc.u32 %v820_v31, %v816_v24  ;;  %v795_v43 = vshrl.u32 %v790_v12, 16 }
  0x9e   : > { %v683_v41 = vsub.s32 %v679_v4, %v682_v35  ;;  %v803_v45 = vadd.s32 %v801_v27, %v799_v32  ;;  %v823_v48 = vsel %vm822_vm3, 1, %v2656_v63  ;;  %v817_v29 = vshrl.u32 %v812_v62, 16 }
  0x9f   : > { %v825_v49 = vadd.s32 %v823_v48, %v821_v26  ;;  %v3084_v50 = vand.u32 31, %v3069_v15  ;;  %v3086_v55 = vadd.s32 %v820_v31, %v816_v24  ;;  %v774_v57 = vsel %vm768_vm12, %v771_v21, %v773_v47 }
  0xa0   : > { %vm684_vm4 = vcmp.lt.s32.totalorder %v683_v41, 0  ;;  %v685_v52 = vsub.s32 0, %v683_v41  ;;  %v804_v54 = vadd.s32 %v803_v45, %v793_v39  ;;  %v559_v60 = vmul.f32 1.442695, %v555_v7 }
  0xa1   : > { %v826_v59 = vadd.s32 %v825_v49, %v815_v18  ;;  %v828_v62 = vmul.u32 %v2947_v34, %v774_v57  ;;  %v3096_v6 = vsub.s32 32, %v3084_v50  ;;  %v675_v2 = vadd.s32 %v3026_v22, %v3040_v37 }
  0xa2   : > { %v686_v28 = vsel %vm684_vm4, %v685_v52, %v683_v41  ;;  %v3090_v61 = vadd.s32 %v804_v54, %v795_v43  ;;  %2437 = vpow2.f32 %v559_v60  ;;  %v889_v7 = vand.u32 2147483647, %v2930_v10 }
  0xa3   : > { %v687_v4 = vclz %v686_v28  ;;  %v827_v46 = vadd.s32 %v826_v59, %v817_v29  ;;  %v705_v14 = vsub.s32 4, %v681_v25  ;;  %v909_v34 = vshll.u32 %v2651_v38, %v3084_v50 }
  0xa4   : > { %vm830_vm5 = vc.u32 %v3090_v61, %v3086_v55  ;;  %v910_v58 = vshrl.u32 %v2652_v40, %v3096_v6  ;;  %v912_v21 = vshll.u32 %v2652_v40, %v3084_v50  ;;  %v913_v22 = vshrl.u32 %v2653_v42, %v3096_v6 }
  0xa5   : > { %v2226_v51 = vadd.s32 4294967294, %v687_v4  ;;  %v831_v12 = vadd.s32 1, %v827_v46  ;;  %vm583_vm7 = vcmp.lt.s32.totalorder %v2924_v8, 0  ;;  %v896_v37 = vand.u32 8388607, %v889_v7 }
  0xa6   : > { %v3113_v0 = vshrl.u32 %v3069_v15, 5  ;;  %v918_v47 = vshll.u32 %v2654_v44, %v3084_v50  ;;  %v706_v31 = vsel %vm583_vm7, %v705_v14, %v681_v25  ;;  %v3119_v32 = vor.u32 %v910_v58, %v909_v34 }
  0xa7   : > { %vm2227_vm6 = vcmp.lt.s32.totalorder %v2226_v51, 0  ;;  %v832_v17 = vsel %vm830_vm5, %v831_v12, %v827_v46  ;;  %v915_v27 = vshll.u32 %v2653_v42, %v3084_v50  ;;  %v916_v18 = vshrl.u32 %v2654_v44, %v3096_v6 }
  0xa8   : > { %v690_v19 = vsel %vm2227_vm6, 0, %v2226_v51  ;;  %v833_v20 = vadd.s32 %v832_v17, %v828_v62  ;;  %v2438_v39 = vpop.eup %2437  ;;  %v919_v15 = vshrl.u32 %v2655_v53, %v3096_v6  ;;  %v3129_v45 = vor.u32 %v913_v22, %v912_v21  ;;  %v550_v17 = vld [vmem:[#allocation11] sm:$0xff] }
  0xa9   : > { %v691_v23 = vsub.s32 32, %v690_v19  ;;  %v692_v33 = vshll.u32 %v683_v41, %v690_v19  ;;  %v695_v24 = vsub.s32 4294967266, %v690_v19  ;;  %vm3133_vm8 = vcmp.le.f32.partialorder %v581_v11, 0.7853982 }
  0xaa   : > { %v834_v35 = vadd.s32 536870912, %v833_v20  ;;  %v897_v48 = vor.u32 8388608, %v896_v37  ;;  %v920_v29 = vor.u32 %v919_v15, %v918_v47  ;;  %vm921_vm9 = vcmp.lt.s32.totalorder %v3113_v0, 1 }
  0xab   : > { %v693_v30 = vshrl.u32 %v675_v2, %v691_v23  ;;  %v696_v16 = vadd.s32 127, %v695_v24  ;;  %vm924_vm10 = vcmp.lt.s32.totalorder %v3113_v0, 4  ;;  %v708_v57 = vsel %vm3133_vm8, 0, %v706_v31 }
  0xac   : > { %v3127_v43 = vshrl.u32 %v834_v35, 30  ;;  %v917_v59 = vor.u32 %v916_v18, %v915_v27  ;;  %vm923_vm11 = vcmp.lt.s32.totalorder %v3113_v0, 3  ;;  %vm922_vm12 = vcmp.lt.s32.totalorder %v3113_v0, 2 }
  0xad   : > { %v694_v26 = vor.u32 %v693_v30, %v692_v33  ;;  %v697_v41 = vshll.u32 %v696_v16, 23  ;;  %v933_v28 = vsel %vm921_vm9, %v3119_v32, %v3129_v45  ;;  %v906_v4 = vshll.u32 %v2650_v36, %v3084_v50 }
  0xae   : > { %v836_v54 = vshll.u32 %v3127_v43, 30  ;;  %v907_v46 = vshrl.u32 %v2651_v38, %v3096_v6  ;;  %v934_v62 = vsel %vm924_vm10, %v920_v29, 1326507024  ;;  %v3156_v51 = vshll.u32 %v897_v48, 8 }
  0xaf   : > { %v698_v49 = vor.u32 4788187, %v697_v41  ;;  %v701_v52 = vcvt.s32.f32 %v694_v26  ;;  %v935_v14 = vsel %vm923_vm11, %v917_v59, %v934_v62  ;;  %v556_v50 = vmul.f32 %v3061_v56, %v2912_v1 }
  0xb0   : > { %v3143_v60 = vsub.s32 %v833_v20, %v836_v54  ;;  %v936_v34 = vsel %vm922_vm12, %v933_v28, %v935_v14  ;;  %v3168_v58 = vand.u32 65535, %v3156_v51  ;;  %v1345_v21 = vadd.s32 3, %v708_v57 }
  0xb1   : > { %v699_v11 = vand.u32 2147483647, %v698_v49  ;;  %v908_v33 = vor.u32 %v907_v46, %v906_v4  ;;  %v941_v24 = vshrl.u32 %v936_v34, 16  ;;  %v3170_v22 = vmul.f32 %v2438_v39, %v550_v17 }
  0xb2   : > { %vm838_vm13 = vcmp.lt.s32.totalorder %v3143_v60, 0  ;;  %v839_v2 = vsub.s32 0, %v3143_v60  ;;  %v3175_v1 = vshrl.u32 %v3156_v51, 16  ;;  %v940_v47 = vand.u32 65535, %v936_v34 }
  0xb3   : > { %v702_v12 = vmul.f32 %v701_v52, %v699_v11  ;;  %v3182_v16 = vmul.f32 1.442695, %v556_v50  ;;  %v905_v35 = vshrl.u32 %v2650_v36, %v3096_v6  ;;  %v829_v27 = vadd.s32 %v3086_v55, %v3090_v61  ;;  %v3289_v11 = vld [vmem:[%s2906_s0] sm:$0xff] }
  0xb4   : > { %v840_v20 = vsel %vm838_vm13, %v839_v2, %v3143_v60  ;;  %v930_v18 = vsel %vm924_vm10, %v917_v59, 920167782  ;;  %v3193_v15 = vmul.u32 %v941_v24, %v3168_v58  ;;  %v3195_v26 = vand.u32 3, %v708_v57 }
  0xb5   : > { %v703_v19 = vxor.u32 2147483648, %v702_v12  ;;  %v841_v23 = vclz %v840_v20  ;;  %v3197_v41 = vand.u32 3, %v1345_v21  ;;  %vm737_vm14 = vcmp.lt.s32.totalorder %v2927_v9, 0 }
  0xb6   : > { %v929_v6 = vsel %vm921_vm9, %v908_v33, %v3119_v32  ;;  %v3204_v61 = vmul.u32 %v940_v47, %v3175_v1  ;;  %v931_v54 = vsel %vm923_vm11, %v3129_v45, %v930_v18  ;;  %vm3212_vm0 = vcmp.le.f32.partialorder %v735_v13, 0.7853982 }
  0xb7   : > { %v704_v37 = vsel %vm583_vm7, %v703_v19, %v702_v12  ;;  %v2229_v31 = vadd.s32 4294967294, %v841_v23  ;;  %v942_v28 = vmul.u32 %v940_v47, %v3168_v58  ;;  %v946_v4 = vshll.u32 %v3193_v15, 16 }
  0xb8   : > { %v3180_v30 = vsel %vm3133_vm8, %v2924_v8, %v704_v37  ;;  %vm730_vm1 = vcmp.eq.s32.totalorder %v3195_v26, 2  ;;  %vm1351_vm2 = vcmp.eq.s32.totalorder %v3197_v41, 2  ;;  %v3222_v62 = vsel %vm921_vm9, %v905_v35, %v908_v33 }
  0xb9   : > { %v709_v39 = vmul.f32 %v3180_v30, %v3180_v30  ;;  %vm2230_vm15 = vcmp.lt.s32.totalorder %v2229_v31, 0  ;;  %v926_v13 = vsel %vm924_vm10, %v3129_v45, 2102212464  ;;  %v859_v14 = vsub.s32 4, %v3127_v43 }
  0xba   : > { %v844_v55 = vsel %vm2230_vm15, 0, %v2229_v31  ;;  %v948_v17 = vshll.u32 %v3204_v61, 16  ;;  %vm727_vm3 = vcmp.eq.s32.totalorder %v3195_v26, 0  ;;  %vm1348_vm4 = vcmp.eq.s32.totalorder %v3197_v41, 0 }
  0xbb   : > { %v710_v25 = vmul.f32 -0.001358992, %v709_v39  ;;  %v717_v48 = vmul.f32 -0.00019511016, %v709_v39  ;;  %v845_v29 = vsub.s32 32, %v844_v55  ;;  %v846_v49 = vshll.u32 %v3143_v60, %v844_v55 }
  0xbc   : > { %v849_v52 = vsub.s32 4294967266, %v844_v55  ;;  %v932_v19 = vsel %vm922_vm12, %v929_v6, %v931_v54  ;;  %v945_v20 = vmul.u32 %v941_v24, %v3175_v1  ;;  %vm726_vm5 = vcmp.lt.s32.totalorder %v3195_v26, 2 }
  0xbd   : > { %v711_v57 = vadd.f32 0.041655596, %v710_v25  ;;  %v718_v59 = vadd.f32 0.008332121, %v717_v48  ;;  %v847_v60 = vshrl.u32 %v829_v27, %v845_v29  ;;  %vm1347_vm6 = vcmp.lt.s32.totalorder %v3197_v41, 2 }
  0xbe   : > { %v850_v46 = vadd.s32 127, %v849_v52  ;;  %vm950_vm7 = vc.u32 %v942_v28, %v946_v4  ;;  %v952_v45 = vadd.s32 %v946_v4, %v942_v28  ;;  %vm724_vm8 = vweird.f32 %v2924_v8 }
  0xbf   : > { %v712_v12 = vmul.f32 %v711_v57, %v709_v39  ;;  %v719_v2 = vmul.f32 %v718_v59, %v709_v39  ;;  %v848_v50 = vor.u32 %v847_v60, %v846_v49  ;;  %v951_v47 = vsel %vm950_vm7, 1, %v2656_v63  ;;  %v3257_v60 = vld [vmem:[#allocation10 + $0x18] sm:$0xff] }
  0xc0   : > { %v851_v34 = vshll.u32 %v850_v46, 23  ;;  %v962_v31 = vand.u32 65535, %v932_v19  ;;  %v860_v24 = vsel %vm737_vm14, %v859_v14, %v3127_v43  ;;  %vm954_vm9 = vc.u32 %v952_v45, %v948_v17 }
  0xc1   : > { %v713_v21 = vadd.f32 -0.4999988, %v712_v12  ;;  %v720_v23 = vadd.f32 -0.16666654, %v719_v2  ;;  %v855_v37 = vcvt.s32.f32 %v848_v50  ;;  %v3244_v6 = vsel %vm923_vm11, %v3119_v32, %v926_v13 }
  0xc2   : > { %v852_v33 = vor.u32 4788187, %v851_v34  ;;  %v953_v25 = vadd.s32 %v951_v47, %v945_v20  ;;  %v963_v48 = vshrl.u32 %v932_v19, 16  ;;  %v955_v49 = vsel %vm954_vm9, 1, %v2656_v63  ;;  %v3286_v47 = vld [vmem:[%s2899_s22] sm:$0xff] }
  0xc3   : > { %v714_v35 = vmul.f32 %v713_v21, %v709_v39  ;;  %v721_v27 = vmul.f32 %v720_v23, %v709_v39  ;;  %v3248_v52 = vmul.u32 %v962_v31, %v3175_v1  ;;  %v862_v43 = vsel %vm3212_vm0, 0, %v860_v24 }
  0xc4   : > { %v853_v18 = vand.u32 2147483647, %v852_v33  ;;  %v964_v54 = vmul.u32 %v962_v31, %v3168_v58  ;;  %v965_v57 = vmul.u32 %v963_v48, %v3168_v58  ;;  %v947_v28 = vshrl.u32 %v3193_v15, 16 }
  0xc5   : > { %v715_v55 = vadd.f32 1.0, %v714_v35  ;;  %v722_v29 = vadd.f32 1.0, %v721_v27  ;;  %v949_v4 = vshrl.u32 %v3204_v61, 16  ;;  %v957_v13 = vadd.s32 %v955_v49, %v953_v25 }
  0xc6   : > { %v856_v39 = vmul.f32 %v855_v37, %v853_v18  ;;  %v967_v12 = vmul.u32 %v963_v48, %v3175_v1  ;;  %v968_v2 = vshll.u32 %v965_v57, 16  ;;  %v575_v1 = vmul.f32 %v2914_v3, %v3257_v60 }
  0xc7   : > { %v723_v32 = vmul.f32 %v722_v29, %v3180_v30  ;;  %v731_v59 = vxor.u32 2147483648, %v715_v55  ;;  %v970_v30 = vshll.u32 %v3248_v52, 16  ;;  %v958_v3 = vadd.s32 %v957_v13, %v947_v28 }
  0xc8   : > { %v857_v46 = vxor.u32 2147483648, %v856_v39  ;;  %vm972_vm10 = vc.u32 %v964_v54, %v968_v2  ;;  %v974_v61 = vadd.s32 %v968_v2, %v964_v54  ;;  %v1500_v24 = vadd.s32 3, %v862_v43 }
  0xc9   : > { %v728_v14 = vxor.u32 2147483648, %v723_v32  ;;  %v732_v17 = vsel %vm730_vm1, %v731_v59, %v723_v32  ;;  %v1353_v58 = vsel %vm1351_vm2, %v731_v59, %v723_v32  ;;  %v973_v20 = vsel %vm972_vm10, 1, %v2656_v63 }
  0xca   : > { %v858_v15 = vsel %vm737_vm14, %v857_v46, %v856_v39  ;;  %v975_v31 = vadd.s32 %v973_v20, %v967_v12  ;;  %vm976_vm11 = vc.u32 %v974_v61, %v970_v30  ;;  %v969_v18 = vshrl.u32 %v965_v57, 16 }
  0xcb   : > { %v729_v50 = vsel %vm727_vm3, %v715_v55, %v728_v14  ;;  %v1350_v34 = vsel %vm1348_vm4, %v715_v55, %v728_v14  ;;  %v861_v19 = vsel %vm3212_vm0, %v2927_v9, %v858_v15  ;;  %v977_v25 = vsel %vm976_vm11, 1, %v2656_v63 }
  0xcc   : > { %v733_v21 = vsel %vm726_vm5, %v729_v50, %v732_v17  ;;  %v1354_v23 = vsel %vm1347_vm6, %v1350_v34, %v1353_v58  ;;  %v863_v45 = vmul.f32 %v861_v19, %v861_v19  ;;  %v3299_v8 = vadd.f32 %v2918_v5, %v575_v1  ;;  %v551_v34 = vld [vmem:[#allocation11 + $0x8] sm:$0xff] }
  0xcd   : > { %v734_v33 = vsel %vm724_vm8, nan, %v733_v21  ;;  %v1355_v37 = vsel %vm724_vm8, nan, %v1354_v23  ;;  %v971_v39 = vshrl.u32 %v3248_v52, 16  ;;  %v979_v54 = vadd.s32 %v977_v25, %v975_v31 }
  0xce   : > { %v3292_v26 = vmul.f32 %v734_v33, %v3170_v22  ;;  %v3295_v41 = vmul.f32 %v1355_v37, %v3170_v22  ;;  %v864_v35 = vmul.f32 -0.001358992, %v863_v45  ;;  %v871_v27 = vmul.f32 -0.00019511016, %v863_v45 }
  0xcf   : > { %v3305_v22 = vadd.s32 %v958_v3, %v949_v4  ;;  %v1046_v57 = vand.u32 2139095040, %v3299_v8  ;;  %v3309_v28 = vadd.s32 %v974_v61, %v970_v30  ;;  %v928_v46 = vsel %vm922_vm12, %v3222_v62, %v3244_v6 }
  0xd0   : > { %v1841_v48 = vmul.f32 %v3286_v47, %v3292_v26  ;;  %v1849_v55 = vmul.f32 %v3289_v11, %v3295_v41  ;;  %v865_v29 = vadd.f32 0.041655596, %v864_v35  ;;  %v872_v49 = vadd.f32 0.008332121, %v871_v27 }
  0xd1   : > { %v980_v13 = vadd.s32 %v979_v54, %v969_v18  ;;  %v1047_v12 = vshrl.u32 %v1046_v57, 23  ;;  %2439 = vpow2.f32 %v3182_v16  ;;  %v879_v2 = vand.u32 3, %v862_v43  ;;  %v3340_v57 = vld [vmem:[%s2899_s22 + $0x8] sm:$0xff] }
  0xd2   : > { %v1857_v32 = vsub.f32 %v1841_v48, %v1849_v55  ;;  %v866_v59 = vmul.f32 %v865_v29, %v863_v45  ;;  %v873_v5 = vmul.f32 %v872_v49, %v863_v45  ;;  %v1501_v14 = vand.u32 3, %v1500_v24 }
  0xd3   : > { %v981_v17 = vadd.s32 %v980_v13, %v971_v39  ;;  %v2234_v58 = vadd.s32 4294967169, %v1047_v12  ;;  %v982_v61 = vmul.u32 %v3156_v51, %v928_v46  ;;  %vm984_vm12 = vc.u32 %v3305_v22, %v3309_v28 }
  0xd4   : > { %1865 = vst [vmem:[%s3316_s2] sm:$0xff] %v1857_v32  ;;  %v867_v52 = vadd.f32 -0.4999988, %v866_v59  ;;  %v874_v4 = vadd.f32 -0.16666654, %v873_v5  ;;  %vm880_vm13 = vcmp.lt.s32.totalorder %v879_v2, 2  ;;  %vm884_vm14 = vcmp.eq.s32.totalorder %v879_v2, 2 }
  0xd5   : > { %v985_v0 = vadd.s32 1, %v981_v17  ;;  %v1053_v62 = vadd.s32 1, %v2234_v58  ;;  %vm1506_vm15 = vcmp.eq.s32.totalorder %v1501_v14, 2  ;;  %v1043_v43 = vand.u32 2147483647, %v3299_v8  ;;  %v3343_v32 = vld [vmem:[%s2906_s0 + $0x8] sm:$0xff] }
  0xd6   : > { %v868_v30 = vmul.f32 %v867_v52, %v863_v45  ;;  %v875_v15 = vmul.f32 %v874_v4, %v863_v45  ;;  %vm881_vm1 = vcmp.eq.s32.totalorder %v879_v2, 0  ;;  %vm1502_vm2 = vcmp.lt.s32.totalorder %v1501_v14, 2 }
  0xd7   : > { %v986_v16 = vsel %vm984_vm12, %v985_v0, %v981_v17  ;;  %vm1054_vm0 = vcmp.gt.s32.totalorder %v1053_v62, 0  ;;  %v2440_v50 = vpop.eup %2439  ;;  %vm1503_vm3 = vcmp.eq.s32.totalorder %v1501_v14, 0  ;;  %vm878_vm4 = vweird.f32 %v2927_v9 }
  0xd8   : > { %v869_v6 = vadd.f32 1.0, %v868_v30  ;;  %v876_v1 = vadd.f32 1.0, %v875_v15  ;;  %v987_v23 = vadd.s32 %v986_v16, %v982_v61  ;;  %v1055_v51 = vsel %vm1054_vm0, %v1053_v62, 0 }
  0xd9   : > { %v1057_v45 = vand.u32 31, %v1055_v51  ;;  %v568_v35 = vmul.f32 %v2440_v50, %v551_v34  ;;  %v3354_v4 = vshrl.u32 %v1055_v51, 5  ;;  %v983_v51 = vadd.s32 %v3309_v28, %v3305_v22 }
  0xda   : > { %v877_v20 = vmul.f32 %v876_v1, %v861_v19  ;;  %v885_v21 = vxor.u32 2147483648, %v869_v6  ;;  %v988_v31 = vadd.s32 536870912, %v987_v23  ;;  %v1050_v19 = vand.u32 8388607, %v1043_v43 }
  0xdb   : > { %v3329_v27 = vsub.s32 32, %v1057_v45  ;;  %v1060_v48 = vshll.u32 %v2650_v36, %v1057_v45  ;;  %v1063_v9 = vshll.u32 %v2651_v38, %v1057_v45  ;;  %v1069_v5 = vshll.u32 %v2653_v42, %v1057_v45 }
  0xdc   : > { %v882_v3 = vxor.u32 2147483648, %v877_v20  ;;  %v886_v33 = vsel %vm884_vm14, %v885_v21, %v877_v20  ;;  %v1508_v37 = vsel %vm1506_vm15, %v885_v21, %v877_v20  ;;  %v3331_v25 = vshrl.u32 %v988_v31, 30 }
  0xdd   : > { %v1061_v49 = vshrl.u32 %v2651_v38, %v3329_v27  ;;  %v1064_v12 = vshrl.u32 %v2652_v40, %v3329_v27  ;;  %v1066_v52 = vshll.u32 %v2652_v40, %v1057_v45  ;;  %v1067_v2 = vshrl.u32 %v2653_v42, %v3329_v27 }
  0xde   : > { %v883_v24 = vsel %vm881_vm1, %v869_v6, %v882_v3  ;;  %v1505_v18 = vsel %vm1503_vm3, %v869_v6, %v882_v3  ;;  %v990_v59 = vshll.u32 %v3331_v25, 30  ;;  %v1070_v14 = vshrl.u32 %v2654_v44, %v3329_v27 }
  0xdf   : > { %v887_v55 = vsel %vm880_vm13, %v883_v24, %v886_v33  ;;  %v1509_v29 = vsel %vm1502_vm2, %v1505_v18, %v1508_v37  ;;  %v1051_v30 = vor.u32 8388608, %v1050_v19  ;;  %v3364_v15 = vor.u32 %v1061_v49, %v1060_v48 }
  0xe0   : > { %v888_v39 = vsel %vm878_vm4, nan, %v887_v55  ;;  %v1510_v54 = vsel %vm878_vm4, nan, %v1509_v29  ;;  %v991_v38 = vsub.s32 %v987_v23, %v990_v59  ;;  %v3366_v61 = vor.u32 %v1064_v12, %v1063_v9 }
  0xe1   : > { %v3347_v46 = vmul.f32 %v888_v39, %v568_v35  ;;  %v3349_v13 = vmul.f32 %v1510_v54, %v568_v35  ;;  %v1071_v0 = vor.u32 %v1070_v14, %v1069_v5  ;;  %v1068_v42 = vor.u32 %v1067_v2, %v1066_v52  ;;  %v2445_v52 = vld [vmem:[#allocation10 + $0x10] sm:$0xff] }
  0xe2   : > { %vm992_vm5 = vcmp.lt.s32.totalorder %v991_v38, 0  ;;  %v993_v40 = vsub.s32 0, %v991_v38  ;;  %v1072_v6 = vshll.u32 %v2654_v44, %v1057_v45  ;;  %v1073_v1 = vshrl.u32 %v2655_v53, %v3329_v27 }
  0xe3   : > { %v1842_v17 = vmul.f32 %v3340_v57, %v3347_v46  ;;  %v1850_v58 = vmul.f32 %v3343_v32, %v3349_v13  ;;  %vm1075_vm6 = vcmp.lt.s32.totalorder %v3354_v4, 1  ;;  %vm1077_vm7 = vcmp.lt.s32.totalorder %v3354_v4, 3 }
  0xe4   : > { %v994_v16 = vsel %vm992_vm5, %v993_v40, %v991_v38  ;;  %v1074_v34 = vor.u32 %v1073_v1, %v1072_v6  ;;  %vm1078_vm8 = vcmp.lt.s32.totalorder %v3354_v4, 4  ;;  %v3377_v21 = vshll.u32 %v1051_v30, 8 }
  0xe5   : > { %v1858_v62 = vsub.f32 %v1842_v17, %v1850_v58  ;;  %v995_v50 = vclz %v994_v16  ;;  %v1084_v20 = vsel %vm1078_vm8, %v1071_v0, 920167782  ;;  %vm1076_vm9 = vcmp.lt.s32.totalorder %v3354_v4, 2 }
  0xe6   : > { %v1083_v44 = vsel %vm1075_vm6, %v3364_v15, %v3366_v61  ;;  %v1085_v53 = vsel %vm1077_vm7, %v1068_v42, %v1084_v20  ;;  %v1088_v45 = vsel %vm1078_vm8, %v1074_v34, 1326507024  ;;  %v1093_v3 = vshrl.u32 %v3377_v21, 16 }
  0xe7   : > { %1866 = vst [vmem:[%s3316_s2 + $0x8] sm:$0xff] %v1858_v62  ;;  %v2232_v23 = vadd.s32 4294967294, %v995_v50  ;;  %v1086_v37 = vsel %vm1076_vm9, %v1083_v44, %v1085_v53  ;;  %v1087_v31 = vsel %vm1075_vm6, %v3366_v61, %v1068_v42  ;;  %v1089_v35 = vsel %vm1077_vm7, %v1071_v0, %v1088_v45 }
  0xe8   : > { %v1116_v28 = vand.u32 65535, %v1086_v37  ;;  %v1092_v18 = vand.u32 65535, %v3377_v21  ;;  %v1090_v29 = vsel %vm1076_vm9, %v1087_v31, %v1089_v35  ;;  %v1117_v39 = vshrl.u32 %v1086_v37, 16 }
  0xe9   : > { %vm2233_vm10 = vcmp.lt.s32.totalorder %v2232_v23, 0  ;;  %v1094_v49 = vand.u32 65535, %v1090_v29  ;;  %v1095_v9 = vshrl.u32 %v1090_v29, 16  ;;  %vm3403_vm11 = vcmp.le.f32.partialorder %v889_v7, 0.7853982 }
  0xea   : > { %v998_v33 = vsel %vm2233_vm10, 0, %v2232_v23  ;;  %vm891_vm12 = vcmp.lt.s32.totalorder %v2930_v10, 0  ;;  %v1120_v12 = vmul.u32 %v1116_v28, %v1093_v3  ;;  %v1118_v40 = vmul.u32 %v1116_v28, %v1092_v18 }
  0xeb   : > { %v999_v19 = vsub.s32 32, %v998_v33  ;;  %v1000_v24 = vshll.u32 %v991_v38, %v998_v33  ;;  %v1003_v22 = vsub.s32 4294967266, %v998_v33  ;;  %v557_v38 = vmul.f32 %v2445_v52, %v3061_v56 }
  0xec   : > { %v1096_v2 = vmul.u32 %v1094_v49, %v1092_v18  ;;  %v1097_v14 = vmul.u32 %v1095_v9, %v1092_v18  ;;  %v1098_v17 = vmul.u32 %v1094_v49, %v1093_v3  ;;  %v1119_v0 = vmul.u32 %v1117_v39, %v1092_v18 }
  0xed   : > { %v1001_v48 = vshrl.u32 %v983_v51, %v999_v19  ;;  %v1004_v55 = vadd.s32 127, %v1003_v22  ;;  %v1059_v7 = vshrl.u32 %v2650_v36, %v3329_v27  ;;  %v1099_v62 = vmul.u32 %v1095_v9, %v1093_v3 }
  0xee   : > { %v1100_v6 = vshll.u32 %v1097_v14, 16  ;;  %v1102_v1 = vshll.u32 %v1098_v17, 16  ;;  %v1013_v50 = vsub.s32 4, %v3331_v25  ;;  %v1122_v34 = vshll.u32 %v1119_v0, 16 }
  0xef   : > { %v1002_v59 = vor.u32 %v1001_v48, %v1000_v24  ;;  %v1005_v5 = vshll.u32 %v1004_v55, 23  ;;  %v1124_v20 = vshll.u32 %v1120_v12, 16  ;;  %v1080_v23 = vsel %vm1078_vm8, %v1068_v42, 2102212464 }
  0xf0   : > { %vm1104_vm13 = vc.u32 %v1096_v2, %v1100_v6  ;;  %v1106_v44 = vadd.s32 %v1100_v6, %v1096_v2  ;;  %v1121_v53 = vmul.u32 %v1117_v39, %v1093_v3  ;;  %vm1126_vm14 = vc.u32 %v1118_v40, %v1122_v34 }
  0xf1   : > { %v1006_v58 = vor.u32 4788187, %v1005_v5  ;;  %v1009_v30 = vcvt.s32.f32 %v1002_v59  ;;  %v1105_v45 = vsel %vm1104_vm13, 1, %v2656_v63  ;;  %v1128_v33 = vadd.s32 %v1122_v34, %v1118_v40 }
  0xf2   : > { %v1101_v36 = vshrl.u32 %v1097_v14, 16  ;;  %v1103_v27 = vshrl.u32 %v1098_v17, 16  ;;  %v1107_v37 = vadd.s32 %v1105_v45, %v1099_v62  ;;  %vm1108_vm15 = vc.u32 %v1106_v44, %v1102_v1 }
  0xf3   : > { %v1007_v16 = vand.u32 2147483647, %v1006_v58  ;;  %v1109_v35 = vsel %vm1108_vm15, 1, %v2656_v63  ;;  %v1127_v19 = vsel %vm1126_vm14, 1, %v2656_v63  ;;  %vm1130_vm0 = vc.u32 %v1128_v33, %v1124_v20 }
  0xf4   : > { %v1111_v24 = vadd.s32 %v1109_v35, %v1107_v37  ;;  %v1123_v42 = vshrl.u32 %v1119_v0, 16  ;;  %v1129_v22 = vadd.s32 %v1127_v19, %v1121_v53  ;;  %v1131_v3 = vsel %vm1130_vm0, 1, %v2656_v63 }
  0xf5   : > { %v1010_v51 = vmul.f32 %v1009_v30, %v1007_v16  ;;  %v1014_v18 = vsel %vm891_vm12, %v1013_v50, %v3331_v25  ;;  %v1079_v48 = vsel %vm1075_vm6, %v1059_v7, %v3364_v15  ;;  %v1081_v55 = vsel %vm1077_vm7, %v3366_v61, %v1080_v23 }
  0xf6   : > { %v1112_v63 = vadd.s32 %v1111_v24, %v1101_v36  ;;  %v1125_v49 = vshrl.u32 %v1120_v12, 16  ;;  %v1133_v9 = vadd.s32 %v1131_v3, %v1129_v22  ;;  %v3432_v59 = vadd.s32 %v1128_v33, %v1124_v20 }
  0xf7   : > { %v1011_v31 = vxor.u32 2147483648, %v1010_v51  ;;  %v1082_v25 = vsel %vm1076_vm9, %v1079_v48, %v1081_v55  ;;  %v1016_v52 = vsel %vm3403_vm11, 0, %v1014_v18  ;;  %v563_v14 = vmul.f32 1.442695, %v557_v38  ;;  %v1827_v55 = vld [vmem:[%s2899_s22 + $0x10] sm:$0xff] }
  0xf8   : > { %v3436_v5 = vadd.s32 %v1112_v63, %v1103_v27  ;;  %v1134_v15 = vadd.s32 %v1133_v9, %v1123_v42  ;;  %v1136_v12 = vmul.u32 %v3377_v21, %v1082_v25  ;;  %v1655_v40 = vadd.s32 3, %v1016_v52 }
  0xf9   : > { %v1012_v28 = vsel %vm891_vm12, %v1011_v31, %v1010_v51  ;;  %2441 = vpow2.f32 %v563_v14  ;;  %v1033_v16 = vand.u32 3, %v1016_v52  ;;  %v552_v51 = vld [vmem:[#allocation11 + $0x10] sm:$0xff]  ;;  %vm1032_vm8 = vweird.f32 %v2930_v10 }
  0xfa   : > { %v1015_v29 = vsel %vm3403_vm11, %v2930_v10, %v1012_v28  ;;  %v1135_v17 = vadd.s32 %v1134_v15, %v1125_v49  ;;  %vm1138_vm1 = vc.u32 %v3436_v5, %v3432_v59  ;;  %v1656_v50 = vand.u32 3, %v1655_v40 }
  0xfb   : > { %v1017_v39 = vmul.f32 %v1015_v29, %v1015_v29  ;;  %vm1038_vm2 = vcmp.eq.s32.totalorder %v1033_v16, 2  ;;  %vm1034_vm4 = vcmp.lt.s32.totalorder %v1033_v16, 2  ;;  %vm1035_vm5 = vcmp.eq.s32.totalorder %v1033_v16, 0 }
  0xfc   : > { %v1139_v4 = vadd.s32 1, %v1135_v17  ;;  %vm1661_vm3 = vcmp.eq.s32.totalorder %v1656_v50, 2  ;;  %vm1657_vm6 = vcmp.lt.s32.totalorder %v1656_v50, 2  ;;  %vm1658_vm7 = vcmp.eq.s32.totalorder %v1656_v50, 0  ;;  %v1838_v50 = vld [vmem:[%s2906_s0 + $0x28] sm:$0xff] }
  0xfd   : > { %v1018_v61 = vmul.f32 -0.001358992, %v1017_v39  ;;  %v1025_v2 = vmul.f32 -0.00019511016, %v1017_v39  ;;  %v1137_v10 = vadd.s32 %v3432_v59, %v3436_v5  ;;  %vm3454_vm11 = vcmp.le.f32.partialorder %v1043_v43, 0.7853982 }
  0xfe   : > { %v1140_v62 = vsel %vm1138_vm1, %v1139_v4, %v1135_v17  ;;  %vm1045_vm12 = vcmp.lt.s32.totalorder %v3299_v8, 0 }
  0xff   : > { %v1019_v58 = vadd.f32 0.041655596, %v1018_v61  ;;  %v1026_v30 = vadd.f32 0.008332121, %v1025_v2  ;;  %v1141_v1 = vadd.s32 %v1140_v62, %v1136_v12  ;;  %v2442_v53 = vpop.eup %2441  ;;  %v1837_v62 = vld [vmem:[%s2906_s0 + $0x20] sm:$0xff] }
 0x100   : > { %v569_v19 = vmul.f32 %v2442_v53, %v552_v51  ;;  %v1853_v16 = vmul.f32 %v1837_v62, %v3295_v41 }
 0x101   : > { %v1020_v0 = vmul.f32 %v1019_v58, %v1017_v39  ;;  %v1027_v7 = vmul.f32 %v1026_v30, %v1017_v39  ;;  %v1142_v20 = vadd.s32 536870912, %v1141_v1 }
 0x103   : > { %v1021_v6 = vadd.f32 -0.4999988, %v1020_v0  ;;  %v1028_v54 = vadd.f32 -0.16666654, %v1027_v7  ;;  %v3443_v21 = vshrl.u32 %v1142_v20, 30  ;;  %v1829_v7 = vld [vmem:[%s2899_s22 + $0x20] sm:$0xff] }
 0x104   : > { %v553_v0 = vld [vmem:[#allocation11 + $0x18] sm:$0xff] }
 0x105   : > { %v1022_v38 = vmul.f32 %v1021_v6, %v1017_v39  ;;  %v1029_v34 = vmul.f32 %v1028_v54, %v1017_v39  ;;  %v1144_v36 = vshll.u32 %v3443_v21, 30  ;;  %v1830_v6 = vld [vmem:[%s2899_s22 + $0x28] sm:$0xff]  ;;  %v1167_v54 = vsub.s32 4, %v3443_v21 }
 0x106   : > { %v1846_v43 = vmul.f32 %v1830_v6, %v3347_v46 }
 0x107   : > { %v1023_v23 = vadd.f32 1.0, %v1022_v38  ;;  %v1030_v44 = vadd.f32 1.0, %v1029_v34  ;;  %v1145_v35 = vsub.s32 %v1141_v1, %v1144_v36  ;;  %v1845_v1 = vmul.f32 %v1829_v7, %v3292_v26  ;;  %v1831_v38 = vld [vmem:[%s2899_s22 + $0x30] sm:$0xff] }
 0x108   : > { %v1839_v34 = vld [vmem:[%s2906_s0 + $0x30] sm:$0xff]  ;;  %v1874_v36 = vmul.f32 %v3340_v57, %v3349_v13  ;;  %v1878_v57 = vmul.f32 %v1830_v6, %v3349_v13 }
 0x109   : > { %v1031_v45 = vmul.f32 %v1030_v44, %v1015_v29  ;;  %v1039_v33 = vxor.u32 2147483648, %v1023_v23  ;;  %vm1146_vm9 = vcmp.lt.s32.totalorder %v1145_v35, 0  ;;  %v1147_v22 = vsub.s32 0, %v1145_v35  ;;  %v1835_v29 = vld [vmem:[%s2906_s0 + $0x10] sm:$0xff] }
 0x10a   : > { %v1861_v51 = vsub.f32 %v1845_v1, %v1853_v16 }
 0x10b   : > { %v1036_v27 = vxor.u32 2147483648, %v1031_v45  ;;  %v1040_v37 = vsel %vm1038_vm2, %v1039_v33, %v1031_v45  ;;  %v1663_v31 = vsel %vm1661_vm3, %v1039_v33, %v1031_v45  ;;  %v1148_v63 = vsel %vm1146_vm9, %v1147_v22, %v1145_v35 }
 0x10c   : > { %v1149_v39 = vclz %v1148_v63  ;;  %v1873_v45 = vmul.f32 %v3286_v47, %v3295_v41  ;;  %v1881_v33 = vmul.f32 %v3289_v11, %v3292_v26  ;;  %1869 = vst [vmem:[%s3316_s2 + $0x20] sm:$0xff] %v1861_v51  ;;  %v1877_v47 = vmul.f32 %v1829_v7, %v3295_v41 }
 0x10d   : > { %v1037_v24 = vsel %vm1035_vm5, %v1023_v23, %v1036_v27  ;;  %v1660_v42 = vsel %vm1658_vm7, %v1023_v23, %v1036_v27  ;;  %v1854_v23 = vmul.f32 %v1838_v50, %v3349_v13  ;;  %v1168_v41 = vsel %vm1045_vm12, %v1167_v54, %v3443_v21 }
 0x10e   : > { %v1041_v3 = vsel %vm1034_vm4, %v1037_v24, %v1040_v37  ;;  %v1664_v28 = vsel %vm1657_vm6, %v1660_v42, %v1663_v31  ;;  %v2235_v52 = vadd.s32 4294967294, %v1149_v39  ;;  %vm1186_vm3 = vweird.f32 %v3299_v8 }
 0x10f   : > { %v1042_v18 = vsel %vm1032_vm8, nan, %v1041_v3  ;;  %v1665_v48 = vsel %vm1032_vm8, nan, %v1664_v28  ;;  %v1862_v37 = vsub.f32 %v1846_v43, %v1854_v23  ;;  %v1885_v3 = vmul.f32 %v1837_v62, %v3292_v26  ;;  %v1836_v23 = vld [vmem:[%s2906_s0 + $0x18] sm:$0xff] }
 0x110   : > { %v1199_v49 = vmul.f32 %v1042_v18, %v569_v19  ;;  %v1823_v9 = vmul.f32 %v1665_v48, %v569_v19  ;;  %vm2236_vm10 = vcmp.lt.s32.totalorder %v2235_v52, 0  ;;  %v1889_v19 = vadd.f32 %v1881_v33, %v1873_v45 }
 0x111   : > { %v1152_v2 = vsel %vm2236_vm10, 0, %v2235_v52  ;;  %1870 = vst [vmem:[%s3316_s2 + $0x28] sm:$0xff] %v1862_v37  ;;  %v1886_v18 = vmul.f32 %v1838_v50, %v3347_v46  ;;  %v1893_v26 = vadd.f32 %v1885_v3, %v1877_v47 }
 0x112   : > { %v1843_v25 = vmul.f32 %v1827_v55, %v1199_v49  ;;  %v1851_v15 = vmul.f32 %v1835_v29, %v1823_v9  ;;  %v1153_v14 = vsub.s32 32, %v1152_v2  ;;  %v1154_v17 = vshll.u32 %v1145_v35, %v1152_v2  ;;  %1897 = vst [vmem:[%s3488_s26] sm:$0xff] %v1889_v19 }
 0x113   : > { %v1157_v58 = vsub.s32 4294967266, %v1152_v2  ;;  %v1847_v44 = vmul.f32 %v1831_v38, %v1199_v49  ;;  %v1855_v53 = vmul.f32 %v1839_v34, %v1823_v9  ;;  %v1882_v35 = vmul.f32 %v3343_v32, %v3347_v46  ;;  %1901 = vst [vmem:[%s3488_s26 + $0x20] sm:$0xff] %v1893_v26 }
 0x114   : > { %v1859_v61 = vsub.f32 %v1843_v25, %v1851_v15  ;;  %v1155_v30 = vshrl.u32 %v1137_v10, %v1153_v14  ;;  %v1875_v24 = vmul.f32 %v1827_v55, %v1823_v9  ;;  %v1883_v42 = vmul.f32 %v1835_v29, %v1199_v49 }
 0x115   : > { %v1158_v12 = vadd.s32 127, %v1157_v58  ;;  %v1863_v31 = vsub.f32 %v1847_v44, %v1855_v53  ;;  %v1890_v11 = vadd.f32 %v1882_v35, %v1874_v36  ;;  %v1879_v48 = vmul.f32 %v1831_v38, %v1823_v9  ;;  %v1828_v38 = vld [vmem:[%s2899_s22 + $0x18] sm:$0xff] }
 0x116   : > { %1867 = vst [vmem:[%s3316_s2 + $0x10] sm:$0xff] %v1859_v61  ;;  %v1156_v40 = vor.u32 %v1155_v30, %v1154_v17  ;;  %v1891_v28 = vadd.f32 %v1883_v42, %v1875_v24  ;;  %v1887_v32 = vmul.f32 %v1839_v34, %v1199_v49  ;;  %v1894_v13 = vadd.f32 %v1886_v18, %v1878_v57  ;;  %v1832_v44 = vld [vmem:[%s2899_s22 + $0x38] sm:$0xff] }
 0x117   : > { %v1159_v4 = vshll.u32 %v1158_v12, 23  ;;  %1871 = vst [vmem:[%s3316_s2 + $0x30] sm:$0xff] %v1863_v31  ;;  %v558_v29 = vmul.f32 %v3061_v56, %v3257_v60  ;;  %v1170_v9 = vsel %vm3454_vm11, 0, %v1168_v41  ;;  %v1840_v53 = vld [vmem:[%s2906_s0 + $0x38] sm:$0xff] }
 0x118   : > { %v1163_v5 = vcvt.s32.f32 %v1156_v40  ;;  %1898 = vst [vmem:[%s3488_s26 + $0x8] sm:$0xff] %v1890_v11  ;;  %v1895_v55 = vadd.f32 %v1887_v32, %v1879_v48  ;;  %v1810_v61 = vadd.s32 3, %v1170_v9  ;;  %v1187_v56 = vand.u32 3, %v1170_v9 }
 0x119   : > { %v1160_v59 = vor.u32 4788187, %v1159_v4  ;;  %1899 = vst [vmem:[%s3488_s26 + $0x10] sm:$0xff] %v1891_v28  ;;  %v565_v21 = vmul.f32 1.442695, %v558_v29 }
 0x11a   : > { %1902 = vst [vmem:[%s3488_s26 + $0x28] sm:$0xff] %v1894_v13  ;;  %v1811_v60 = vand.u32 3, %v1810_v61  ;;  %vm1192_vm13 = vcmp.eq.s32.totalorder %v1187_v56, 2  ;;  %vm1188_vm15 = vcmp.lt.s32.totalorder %v1187_v56, 2  ;;  %vm1189_vm0 = vcmp.eq.s32.totalorder %v1187_v56, 0 }
 0x11b   : > { %v1161_v20 = vand.u32 2147483647, %v1160_v59  ;;  %1903 = vst [vmem:[%s3488_s26 + $0x30] sm:$0xff] %v1895_v55  ;;  %2443 = vpow2.f32 %v565_v21 }
 0x11c   : > { %vm1816_vm14 = vcmp.eq.s32.totalorder %v1811_v60, 2  ;;  %vm1813_vm1 = vcmp.eq.s32.totalorder %v1811_v60, 0  ;;  %vm1812_vm2 = vcmp.lt.s32.totalorder %v1811_v60, 2 }
 0x11d   : > { %v1164_v27 = vmul.f32 %v1163_v5, %v1161_v20 }
 0x11f   : > { %v1165_v22 = vxor.u32 2147483648, %v1164_v27 }
 0x121   : > { %v1166_v63 = vsel %vm1045_vm12, %v1165_v22, %v1164_v27  ;;  %v2444_v4 = vpop.eup %2443 }
 0x122   : > { %v1169_v46 = vsel %vm3454_vm11, %v3299_v8, %v1166_v63  ;;  %v570_v54 = vmul.f32 %v2444_v4, %v553_v0 }
 0x123   : > { %v1171_v49 = vmul.f32 %v1169_v46, %v1169_v46 }
 0x125   : > { %v1172_v39 = vmul.f32 -0.001358992, %v1171_v49  ;;  %v1179_v25 = vmul.f32 -0.00019511016, %v1171_v49 }
 0x127   : > { %v1173_v15 = vadd.f32 0.041655596, %v1172_v39  ;;  %v1180_v52 = vadd.f32 0.008332121, %v1179_v25 }
 0x129   : > { %v1174_v10 = vmul.f32 %v1173_v15, %v1171_v49  ;;  %v1181_v2 = vmul.f32 %v1180_v52, %v1171_v49 }
 0x12b   : > { %v1175_v14 = vadd.f32 -0.4999988, %v1174_v10  ;;  %v1182_v17 = vadd.f32 -0.16666654, %v1181_v2 }
 0x12d   : > { %v1176_v58 = vmul.f32 %v1175_v14, %v1171_v49  ;;  %v1183_v30 = vmul.f32 %v1182_v17, %v1171_v49 }
 0x12f   : > { %v1177_v12 = vadd.f32 1.0, %v1176_v58  ;;  %v1184_v40 = vadd.f32 1.0, %v1183_v30 }
 0x131   : > { %v1185_v59 = vmul.f32 %v1184_v40, %v1169_v46  ;;  %v1193_v5 = vxor.u32 2147483648, %v1177_v12 }
 0x133   : > { %v1190_v7 = vxor.u32 2147483648, %v1185_v59  ;;  %v1194_v62 = vsel %vm1192_vm13, %v1193_v5, %v1185_v59  ;;  %v1818_v6 = vsel %vm1816_vm14, %v1193_v5, %v1185_v59 }
 0x135   : > { %v1191_v1 = vsel %vm1189_vm0, %v1177_v12, %v1190_v7  ;;  %v1815_v16 = vsel %vm1813_vm1, %v1177_v12, %v1190_v7 }
 0x136   : > { %v1195_v50 = vsel %vm1188_vm15, %v1191_v1, %v1194_v62  ;;  %v1819_v43 = vsel %vm1812_vm2, %v1815_v16, %v1818_v6 }
 0x137   : > { %v1196_v34 = vsel %vm1186_vm3, nan, %v1195_v50  ;;  %v1820_v20 = vsel %vm1186_vm3, nan, %v1819_v43 }
 0x138   : > { %v1200_v51 = vmul.f32 %v1196_v34, %v570_v54  ;;  %v1824_v45 = vmul.f32 %v1820_v20, %v570_v54 }
 0x13a   : > { %v1844_v33 = vmul.f32 %v1828_v38, %v1200_v51  ;;  %v1852_v36 = vmul.f32 %v1836_v23, %v1824_v45  ;;  %v1848_v8 = vmul.f32 %v1832_v44, %v1200_v51  ;;  %v1856_v27 = vmul.f32 %v1840_v53, %v1824_v45 }
 0x13b   : > { %v1876_v37 = vmul.f32 %v1828_v38, %v1824_v45  ;;  %v1884_v31 = vmul.f32 %v1836_v23, %v1200_v51  ;;  %v1880_v35 = vmul.f32 %v1832_v44, %v1824_v45  ;;  %v1888_v19 = vmul.f32 %v1840_v53, %v1200_v51 }
 0x13c   : > { %v1860_v24 = vsub.f32 %v1844_v33, %v1852_v36  ;;  %v1864_v42 = vsub.f32 %v1848_v8, %v1856_v27 }
 0x13d   : > { %v1892_v47 = vadd.f32 %v1884_v31, %v1876_v37  ;;  %v1896_v22 = vadd.f32 %v1888_v19, %v1880_v35 }
 0x13e   : > { %1868 = vst [vmem:[%s3316_s2 + $0x18] sm:$0xff] %v1860_v24 }
 0x13f   : > { %1872 = vst [vmem:[%s3316_s2 + $0x38] sm:$0xff] %v1864_v42 }
 0x140   : > { %1900 = vst [vmem:[%s3488_s26 + $0x18] sm:$0xff] %v1892_v47 }
 0x141   : > { %1904 = vst [vmem:[%s3488_s26 + $0x38] sm:$0xff] %v1896_v22 }
 0x142   : > { %s2259_s4 = sshll.u32 %s2621_s30, 5  ;;  %s1935_s16 = sshll.u32 %s3316_s2, 4  ;;  %s1936_s16 = int_to_ptr.vmem [resolvable:$true] %s1935_s16 }
 0x143   : > { %s1924_s13 = scalar_lea.hbm %s3585_s7, %s2259_s4  ;;  %s2657_s21 = smov 512  }
 0x144   : > { %s1937_s3 = sshll.u32 %s1924_s13, 4  ;;  %2299 = sst [smem:[#allocation23]] (%p2773_p9), %s2657_s21  ;;  %s1938_s3 = int_to_ptr.hbm [resolvable:$true] %s1937_s3 }
 0x145   : > { %s2658_s15 = smov 1536   ;;  %s2659_s19 = smov 4  }
 0x146   : > { %2300 = sst [smem:[#allocation23 + $0x1]] (%p2773_p9), %s2658_s15  ;;  %s2660_s30 = smov 128  }
 0x147   : > { %2301 = sst [smem:[#allocation23 + $0x2]] (%p2773_p9), %s2659_s19  ;;  %s2661_s25 = smov 8  }
 0x148   : > { %2302 = sst [smem:[#allocation23 + $0x3]] (%p2773_p9), %s2660_s30  ;;  %s2662_s22 = smov [#allocation22]  }
 0x149   : > { %2303 = sst [smem:[#allocation23 + $0x4]] (%p2773_p9), %s2660_s30  ;;  %s2663_s0 = smov 0  }
 0x14a   : > { %2304 = sst [smem:[#allocation23 + $0x5]] (%p2773_p9), %s2661_s25 }
 0x14b   : > { %2305 = dma.general (%p2773_p9), %s1936_s16, 1024, %s1938_s3, %s1906_s1, %s2662_s22, [#allocation23], %s2663_s0, 0  }
 0x14c   : > { %s1966_s17 = scalar_lea.hbm %s3586_s8, %s2259_s4  ;;  %s1977_s2 = sshll.u32 %s3488_s26, 4  ;;  %s1978_s2 = int_to_ptr.vmem [resolvable:$true] %s1977_s2 }
 0x14d   : > { %s1979_s12 = sshll.u32 %s1966_s17, 4  ;;  %s2664_s14 = smov 512   ;;  %s1980_s12 = int_to_ptr.hbm [resolvable:$true] %s1979_s12 }
 0x14e   : > { %2306 = sst [smem:[#allocation25]] (%p2773_p9), %s2664_s14  ;;  %s2665_s1 = smov 1536  }
 0x14f   : > { %2307 = sst [smem:[#allocation25 + $0x1]] (%p2773_p9), %s2665_s1  ;;  %s2666_s16 = smov 4  }
 0x150   : > { %2308 = sst [smem:[#allocation25 + $0x2]] (%p2773_p9), %s2666_s16  ;;  %s2667_s13 = smov 128  }
 0x151   : > { %2309 = sst [smem:[#allocation25 + $0x3]] (%p2773_p9), %s2667_s13  ;;  %s2668_s26 = smov 8  }
 0x152   : > { %2310 = sst [smem:[#allocation25 + $0x4]] (%p2773_p9), %s2667_s13  ;;  %s2669_s4 = smov [#allocation24]  }
 0x153   : > { %2311 = sst [smem:[#allocation25 + $0x5]] (%p2773_p9), %s2668_s26  ;;  %s2670_s3 = smov 0  }
 0x154   : > { %2312 = dma.general (%p2773_p9), %s1978_s2, 1024, %s1980_s12, %s1911_s20, %s2669_s4, [#allocation25], %s2670_s3, 0  }
 0x155 PF: > { %p2348_p4 = scmp.ge.s32.totalorder %s2629_s10, 2  ;;  %s2007_s15 = sand.u32 1, %s2609_s27  }
 0x156   : > { %s2008_s19 = scalar_lea.sflag [#allocation4], %s2007_s15 }
 0x157   : > { %p2332_p5 = pnand %p2348_p4, %p2780_p11 }
 0x159   : > { %p2333_p6 = pneg %p2332_p5 }
 0x15b   : > { %2600 = dma.done.wait (%p2333_p6), %s2008_s19, 1024  }
 0x15c   : > { %2602 = vsyncadd (%p2333_p6), %s2008_s19, 4294966272  ;;  %s2018_s30 = scalar_lea.sflag [#allocation17], %s2007_s15 }
 0x15d   : > { %2604 = dma.done.wait (%p2333_p6), %s2018_s30, 1024  }
 0x15e   : > { %2606 = vsyncadd (%p2333_p6), %s2018_s30, 4294966272  ;;  %s30_s10 = sadd.s32 1, %s2629_s10   ;;  %s3617_s18 = sld [smem:[#allocation37_spill]] }
 0x15f   : > { %p27_p7 = scmp.ge.s32.totalorder %s30_s10, 5   ;;  %s3618_s24 = sld [smem:[#allocation36_spill]] }
 0x160   : > { %s3619_s27 = smov %s2613_s28  ;;  %s3620_s28 = smov %s2617_s29 }
 0x161   : > { %s3622_s30 = smov %s2625_s9  ;;  %29 = sbr.rel (!%p27_p7) target bundleno = 17 (0x11), region = 164 }
 0x164   : > { %s3621_s29 = smov %s3617_s18 }
 0x165   : > { %s3623_s9 = smov %s3618_s24 }
 0x166   :  { %2024 = vsyncpa [#allocation3], 1 }
 0x167   :  { %2026 = vsyncpa [#allocation3 + $0x1], 1 }
 0x168   :  { %2027 = vsyncpa [#allocation12], 1 }
 0x169   :  { %2028 = vsyncpa [#allocation4], 1 }
 0x16a   :  { %2030 = vsyncpa [#allocation4 + $0x1], 1 }
 0x16b   :  { %2031 = vsyncpa [#allocation17], 1 }
 0x16c   :  { %2033 = vsyncpa [#allocation17 + $0x1], 1 }
 0x16d   :  { %2034 = vsyncpa [#allocation5], 1 }
 0x16e   :  { %2036 = vsyncpa [#allocation5 + $0x1], 1 }
 0x16f   :  { %2037 = vsyncpa [#allocation8], 1 }
 0x170   :  { %2038 = vsyncpa [#allocation6], 1 }
 0x171   :  { %2040 = vsyncpa [#allocation6 + $0x1], 1 }

</bundles_post_ra>
